<compile_context>
chip_gen: v7x
topology: tpu7x:2x2x1
jax: 0.10.0
libtpu: 0.0.40
codegen_flags: <defaults>
</compile_context>

<pallas_src>
import math

import jax
import jax.numpy as jnp
from jax.experimental import pallas as pl
from jax.experimental.pallas import tpu as pltpu

# ----------------------------- hyper-parameters ------------------------------
D_MODEL = 32
NHEAD = 4
D_HEAD = D_MODEL // NHEAD
NUM_EXPERTS = 3
D_FF = 64
D_LONG = 3
B = 2
T = 8
BT = B * T
LN_EPS = 1e-5

D_OUT = D_LONG + 1                 # packed head output: [long(3) | surv(1)]
E_F = NUM_EXPERTS * D_FF           # 192
NE_PAD = D_MODEL                   # gate logits padded to 32 lanes (aligned contractions)

# ---- blob_w32 column offsets (every matrix has D_MODEL rows, packed along lanes) ----
OFF_WQ = 0                                 # [Wq | Wk | Wv] contiguous, width 3*D
OFF_WKV = OFF_WQ + D_MODEL
OFF_WO = OFF_WKV + 2 * D_MODEL
OFF_W1 = OFF_WO + D_MODEL                  # all experts' first layers, width E*F
OFF_WGL = OFF_W1 + E_F                     # gate_long weights padded to NE_PAD cols
OFF_WGS = OFF_WGL + NE_PAD                 # gate_surv (adjacent -> fused logits matmul)
OFF_WL = OFF_WGS + NE_PAD                  # longitudinal head padded to D_OUT cols
OFF_WS = OFF_WL + D_OUT                    # survival head padded to D_OUT cols (adjacent)
OFF_SEL = OFF_WS + D_OUT                   # expert-column selector (NE_PAD, E*F)
OFF_B2S = OFF_SEL + E_F                    # stacked b2 biases (NE_PAD, D) (adjacent to sel)
W32_COLS = OFF_B2S + D_MODEL               # 616

# ---- blob_bias column offsets (single (1, n) row) ----
OFF_BQ = 0                                 # [bq | bk | bv] contiguous, width 3*D
OFF_BKV = OFF_BQ + D_MODEL
OFF_BO = OFF_BKV + 2 * D_MODEL
OFF_GAMMA = OFF_BO + D_MODEL
OFF_BETA = OFF_GAMMA + D_MODEL
OFF_B1 = OFF_BETA + D_MODEL                # width E*F
OFF_BGL = OFF_B1 + E_F                     # width NE_PAD (dummy cols = -1e9)
OFF_BGS = OFF_BGL + NE_PAD                 # adjacent -> fused gate-bias add
OFF_BHEAD = OFF_BGS + NE_PAD               # width D_OUT  ([bl | bs])
BIAS_COLS = OFF_BHEAD + D_OUT              # 452


# ------------------------------- glue (JAX) ----------------------------------
def positional_encoding(batch, length, d_model, obs_time):
    """Sinusoidal PE evaluated at continuous observation times. obs_time: (B, T)."""
    i = jnp.arange(0, d_model, 2, dtype=jnp.float32)
    div_term = jnp.exp(i * (-math.log(10000.0) / d_model))      # (d_model//2,)
    pos = obs_time.astype(jnp.float32)[..., None]               # (B, T, 1)
    pe = jnp.zeros((batch, length, d_model), jnp.float32)
    pe = pe.at[..., 0::2].set(jnp.sin(pos * div_term))
    pe = pe.at[..., 1::2].set(jnp.cos(pos * div_term))
    return pe


def pack_params(p):
    """Pack all weights/biases into 3 contiguous f32 blobs (fewer, larger DMAs)."""
    D, E, F = D_MODEL, NUM_EXPERTS, D_FF
    f32 = jnp.float32

    w1_packed = jnp.concatenate([p["W1"][e] for e in range(E)], axis=1)          # (D, E*F)
    wgl_pad = jnp.zeros((D, NE_PAD), f32).at[:, :E].set(p["Wgl"])
    wgs_pad = jnp.zeros((D, NE_PAD), f32).at[:, :E].set(p["Wgs"])
    wl_pad = jnp.zeros((D, D_OUT), f32).at[:, :D_LONG].set(p["Wl"])
    ws_pad = jnp.zeros((D, D_OUT), f32).at[:, D_LONG:].set(p["Ws"])
    sel = jnp.zeros((NE_PAD, E_F), f32).at[:E].set(
        jnp.repeat(jnp.eye(E, dtype=f32), F, axis=1))                            # (NE_PAD, E*F)
    b2s = jnp.zeros((NE_PAD, D), f32).at[:E].set(p["b2"])                        # (NE_PAD, D)

    blob_w32 = jnp.concatenate(
        [p["Wq"], p["Wk"], p["Wv"], p["Wo"], w1_packed,
         wgl_pad, wgs_pad, wl_pad, ws_pad, sel, b2s], axis=1).astype(f32)
    assert blob_w32.shape == (D, W32_COLS)

    bg_fill = jnp.full((NE_PAD,), -1e9, f32)     # dummy gate logits -> exp() == 0 exactly
    bgl_pad = bg_fill.at[:E].set(p["bgl"].reshape(-1))
    bgs_pad = bg_fill.at[:E].set(p["bgs"].reshape(-1))
    b_head = jnp.concatenate([p["bl"].reshape(-1), p["bs"].reshape(-1)])
    blob_bias = jnp.concatenate(
        [p["bq"].reshape(-1), p["bk"].reshape(-1), p["bv"].reshape(-1), p["bo"].reshape(-1),
         p["gamma"].reshape(-1), p["beta"].reshape(-1), p["b1"].reshape(-1),
         bgl_pad, bgs_pad, b_head]).reshape(1, -1).astype(f32)
    assert blob_bias.shape == (1, BIAS_COLS)

    blob_w2 = p["W2"].reshape(E_F, D).astype(f32)                                # (E*F, D)
    return blob_w32, blob_w2, blob_bias


# ------------------------------ Pallas kernel --------------------------------
def decoder_mmoe_kernel(qkv_ref, nmask_ref, w32_ref, w2_ref, bias_ref, out_ref):
    f32 = jnp.float32
    qkv_in = qkv_ref[...]        # (2*BT, D): rows 0:BT = q (+PE), rows BT:2BT = kv
    nmask = nmask_ref[...]       # (BT, BT) additive mask: 0 where attend, -1e9 where masked

    def bias(lo, n):
        # (1, n) row; broadcasts over sublanes in the add (known-good lowering).
        return bias_ref[0:1, lo:lo + n]

    def softmax(x):
        m = jnp.max(x, axis=-1, keepdims=True)
        e = jnp.exp(x - m)
        return e * pl.reciprocal(jnp.sum(e, axis=-1, keepdims=True), approx=True)

    # ---- fused Q/K/V projection: single (2*BT, D) @ (D, 3*D) matmul -------------------
    # rows 0:BT / lanes 0:D   -> q @ Wq ;  rows BT:2BT / lanes D:3D -> kv @ [Wk|Wv]
    # (cross quadrants discarded; adding the full [bq|bk|bv] row is harmless there)
    qkv = (jnp.dot(qkv_in, w32_ref[:, OFF_WQ:OFF_WQ + 3 * D_MODEL],
                   preferred_element_type=f32) + bias(OFF_BQ, 3 * D_MODEL))
    qs = qkv[0:BT, 0:D_MODEL]                           # (BT, D)    Q
    kvs = qkv[BT:2 * BT, D_MODEL:3 * D_MODEL]           # (BT, 2*D)  [K | V]

    # ---- multi-head attention (batch folded into block-diagonal mask) -----------------
    scale = 1.0 / math.sqrt(D_HEAD)
    heads = []
    for h in range(NHEAD):
        lo = h * D_HEAD
        Qh = qs[:, lo:lo + D_HEAD]                                       # (BT, Dh)
        Kh = kvs[:, lo:lo + D_HEAD]                                      # (BT, Dh)
        Vh = kvs[:, D_MODEL + lo:D_MODEL + lo + D_HEAD]                  # (BT, Dh)
        scores = jax.lax.dot_general(Qh, Kh, (((1,), (1,)), ((), ())),
                                     preferred_element_type=f32) * scale + nmask
        heads.append(jnp.dot(softmax(scores), Vh, preferred_element_type=f32))
    # lane-pack heads, then one (BT, D) @ (D, D) matmul against the full Wo block
    attn = (jnp.dot(jnp.concatenate(heads, axis=-1),
                    w32_ref[:, OFF_WO:OFF_WO + D_MODEL], preferred_element_type=f32)
            + bias(OFF_BO, D_MODEL))

    # ---- residual + LayerNorm (dropout = identity at inference) -----------------------
    # two independent reduces (overlap in the XLU); var = E[x^2] - mean^2
    x = qkv_in[0:BT, :] + attn
    inv_d = 1.0 / D_MODEL
    mean = jnp.sum(x, axis=-1, keepdims=True) * inv_d
    mean_sq = jnp.sum(x * x, axis=-1, keepdims=True) * inv_d
    var = mean_sq - mean * mean
    xn = (x - mean) * jax.lax.rsqrt(var + LN_EPS)
    xn = xn * bias(OFF_GAMMA, D_MODEL) + bias(OFF_BETA, D_MODEL)

    # ---- MMoE: all experts' first layers in one lane-filling matmul -------------------
    h1 = jnp.maximum(
        jnp.dot(xn, w32_ref[:, OFF_W1:OFF_W1 + E_F], preferred_element_type=f32)
        + bias(OFF_B1, E_F), 0.0)                                        # (BT, E*F)

    # ---- both task gates in one matmul (Wgl|Wgs and bgl|bgs are adjacent) -------------
    logits2 = (jnp.dot(xn, w32_ref[:, OFF_WGL:OFF_WGL + 2 * NE_PAD],
                       preferred_element_type=f32) + bias(OFF_BGL, 2 * NE_PAD))
    g_long = softmax(logits2[:, :NE_PAD])                                # (BT, NE_PAD)
    g_surv = softmax(logits2[:, NE_PAD:])                                # (BT, NE_PAD)

    # ---- row-stack the two gating branches so every remaining matmul runs once --------
    g2 = jnp.concatenate([g_long, g_surv], axis=0)                       # (2*BT, NE_PAD)
    # g@sel (broadcast gate to expert lanes) and g@b2s (gated bias) fused: sel|b2s adjacent
    mix2 = jnp.dot(g2, w32_ref[:, OFF_SEL:OFF_SEL + E_F + D_MODEL],
                   preferred_element_type=f32)                           # (2*BT, E*F + D)
    gb2 = mix2[:, :E_F]
    gbias2 = mix2[:, E_F:]
    # gating commutes with the (linear) expert second layer: fold it in, both branches at once
    h1_2 = jnp.concatenate([h1, h1], axis=0)                             # (2*BT, E*F)
    comb2 = jnp.dot(h1_2 * gb2, w2_ref[...], preferred_element_type=f32) + gbias2  # (2*BT, D)

    # ---- task heads: one matmul against the adjacent [Wl_pad | Ws_pad] block ----------
    head2 = jnp.dot(comb2, w32_ref[:, OFF_WL:OFF_WL + 2 * D_OUT],
                    preferred_element_type=f32)                          # (2*BT, 2*D_OUT)
    out4 = head2[0:BT, 0:D_OUT] + head2[BT:2 * BT, D_OUT:2 * D_OUT] + bias(OFF_BHEAD, D_OUT)

    # lanes [:3] = longitudinal, lane [3] = sigmoid(survival logit)
    col = jax.lax.broadcasted_iota(jnp.int32, out4.shape, 1)
    sig = pl.reciprocal(1.0 + jnp.exp(-out4), approx=True)
    out_ref[...] = jnp.where(col == D_LONG, sig, out4)


# ------------------------------ wrapper ---------------------------------------
def decoder_mmoe_forward(q, kv, mask, pred_time, p):
    Bn, Tn, Dn = q.shape
    bt = Bn * Tn
    assert (Bn, Tn, Dn) == (B, T, D_MODEL)

    # fold positional encoding into q host-side; stack q(+PE) and kv into one input so the
    # Q and [K|V] projections become a single matmul in-kernel.
    pe = positional_encoding(Bn, Tn, Dn, pred_time)
    q_pe = (q.astype(jnp.float32) + pe).reshape(bt, Dn)
    kv_flat = kv.astype(jnp.float32).reshape(bt, Dn)
    qkv_in = jnp.concatenate([q_pe, kv_flat], axis=0)                    # (2*BT, D)

    # fold batch into one block-diagonal additive mask: exp(-1e9 + s) underflows to 0,
    # so one (BT, BT) softmax per head is exactly equivalent to per-batch attention.
    eye = jnp.eye(Bn, dtype=jnp.float32)[:, None, :, None]               # (B,1,B,1)
    big = (eye * mask.astype(jnp.float32)[:, :, None, :]).reshape(bt, bt)
    neg_mask = jnp.where(big == 0.0, -1e9, 0.0).astype(jnp.float32)

    blob_w32, blob_w2, blob_bias = pack_params(p)

    def full(shape):
        nd = len(shape)
        return pl.BlockSpec(shape, lambda i, _n=nd: (0,) * _n)

    out4 = pl.pallas_call(
        decoder_mmoe_kernel,
        out_shape=jax.ShapeDtypeStruct((bt, D_OUT), jnp.float32),
        grid_spec=pltpu.PrefetchScalarGridSpec(
            num_scalar_prefetch=0,
            grid=(1,),                                  # whole problem in one step
            in_specs=[full((2 * bt, Dn)),               # stacked [q(+PE); kv]
                      full((bt, bt)),                   # additive mask
                      full((D_MODEL, W32_COLS)),        # packed D-row weights
                      full((E_F, D_MODEL)),             # stacked expert second layers
                      full((1, BIAS_COLS))],            # packed biases / LN affine
            out_specs=full((bt, D_OUT)),
        ),
        compiler_params=pltpu.CompilerParams(dimension_semantics=("arbitrary",)),
    )(qkv_in, neg_mask, blob_w32, blob_w2, blob_bias)

    long_out = out4[:, :D_LONG].reshape(Bn, Tn, D_LONG)
    surv_out = out4[:, D_LONG:].reshape(Bn, Tn, 1)
    return long_out, surv_out


# --------------------------- parameter init (deterministic) -------------------
def init_params(key):
    D, E, F = D_MODEL, NUM_EXPERTS, D_FF
    ks = jax.random.split(key, 20)

    def w(k, shape, fan_in):
        return jax.random.normal(k, shape, jnp.float32) * (1.0 / math.sqrt(fan_in))

    p = {
        "Wq": w(ks[0], (D, D), D), "bq": w(ks[1], (1, D), D),
        "Wk": w(ks[2], (D, D), D), "bk": w(ks[3], (1, D), D),
        "Wv": w(ks[4], (D, D), D), "bv": w(ks[5], (1, D), D),
        "Wo": w(ks[6], (D, D), D), "bo": w(ks[7], (1, D), D),
        "gamma": jnp.ones((1, D), jnp.float32),
        "beta": jnp.zeros((1, D), jnp.float32),
        "W1": w(ks[8], (E, D, F), D), "b1": w(ks[9], (E, F), D),
        "W2": w(ks[10], (E, F, D), F), "b2": w(ks[11], (E, D), F),
        "Wgl": w(ks[12], (D, E), D), "bgl": w(ks[13], (1, E), D),
        "Wgs": w(ks[14], (D, E), D), "bgs": w(ks[15], (1, E), D),
        "Wl": w(ks[16], (D, D_LONG), D), "bl": w(ks[17], (1, D_LONG), D),
        "Ws": w(ks[18], (D, 1), D), "bs": w(ks[19], (1, 1), D),
    }
    return p


# ------------------------------ pure-JAX reference ----------------------------
def reference(p, q, kv, mask, pred_time):
    Bn, Tn, Dn = q.shape
    qp = q + positional_encoding(Bn, Tn, Dn, pred_time)
    Q = qp @ p["Wq"] + p["bq"]
    K = kv @ p["Wk"] + p["bk"]
    V = kv @ p["Wv"] + p["bv"]
    Qh = Q.reshape(Bn, Tn, NHEAD, D_HEAD).transpose(0, 2, 1, 3)
    Kh = K.reshape(Bn, Tn, NHEAD, D_HEAD).transpose(0, 2, 1, 3)
    Vh = V.reshape(Bn, Tn, NHEAD, D_HEAD).transpose(0, 2, 1, 3)
    scores = jnp.einsum("bhqd,bhkd->bhqk", Qh, Kh) / math.sqrt(D_HEAD)
    scores = jnp.where(mask[:, None, :, :] == 0.0, -1e9, scores)
    probs = jax.nn.softmax(scores, axis=-1)
    attn = jnp.einsum("bhqk,bhkd->bhqd", probs, Vh).transpose(0, 2, 1, 3).reshape(Bn, Tn, Dn)
    attn = attn @ p["Wo"] + p["bo"]
    x = qp + attn
    mean = x.mean(-1, keepdims=True)
    var = ((x - mean) ** 2).mean(-1, keepdims=True)
    xn = (x - mean) / jnp.sqrt(var + LN_EPS) * p["gamma"] + p["beta"]
    experts = []
    for e in range(NUM_EXPERTS):
        h = jax.nn.relu(xn @ p["W1"][e] + p["b1"][e])
        experts.append(h @ p["W2"][e] + p["b2"][e])
    eo = jnp.stack(experts, axis=2)                                   # (B, T, E, D)
    gl = jax.nn.softmax(xn @ p["Wgl"] + p["bgl"], axis=-1)[..., None]
    gs = jax.nn.softmax(xn @ p["Wgs"] + p["bgs"], axis=-1)[..., None]
    cl = (eo * gl).sum(2)
    cs = (eo * gs).sum(2)
    long_out = cl @ p["Wl"] + p["bl"]
    surv_out = jax.nn.sigmoid(cs @ p["Ws"] + p["bs"])
    return long_out, surv_out


# ----------------------------------- main --------------------------------------
if __name__ == "__main__":
    key = jax.random.PRNGKey(0)
    k_q, k_kv, k_p = jax.random.split(key, 3)
    q = jax.random.normal(k_q, (B, T, D_MODEL), jnp.float32)
    kv = jax.random.normal(k_kv, (B, T, D_MODEL), jnp.float32)
    mask = jnp.broadcast_to(jnp.tril(jnp.ones((T, T), jnp.float32)), (B, T, T))
    pred_time = jnp.broadcast_to(jnp.arange(T, dtype=jnp.float32) * 0.5, (B, T))
    params = init_params(k_p)

    long_out, surv_out = decoder_mmoe_forward(q, kv, mask, pred_time, params)
    jax.block_until_ready((long_out, surv_out))

    ref_long, ref_surv = reference(params, q, kv, mask, pred_time)
    assert long_out.shape == (B, T, D_LONG) and surv_out.shape == (B, T, 1)
    assert jnp.allclose(long_out, ref_long, atol=2e-2, rtol=2e-2), "longitudinal mismatch"
    assert jnp.allclose(surv_out, ref_surv, atol=2e-2, rtol=2e-2), "survival mismatch"

    print("KERNEL_OK")
</pallas_src>

<mosaic_0001>
module attributes {stable_mosaic.version = 11 : i64} {
  func.func @decoder_mmoe_kernel(%arg0: i32, %arg1: memref<32x32xf32, #tpu.memory_space<vmem>>, %arg2: memref<16x16xf32, #tpu.memory_space<vmem>>, %arg3: memref<32x616xf32, #tpu.memory_space<vmem>>, %arg4: memref<192x32xf32, #tpu.memory_space<vmem>>, %arg5: memref<1x452xf32, #tpu.memory_space<vmem>>, %arg6: memref<16x4xf32, #tpu.memory_space<vmem>>) attributes {dimension_semantics = [#tpu.dimension_semantics<arbitrary>], iteration_bounds = array<i64: 1>, scalar_prefetch = 0 : i64, scratch_operands = 0 : i64, tpu.core_type = #tpu.core_type<tc>, window_params = [{pipeline_mode = #tpu.pipeline_mode<synchronous>, transform_indices = @transform_0, window_bounds = array<i64: 32, 32>}, {pipeline_mode = #tpu.pipeline_mode<synchronous>, transform_indices = @transform_1, window_bounds = array<i64: 16, 16>}, {pipeline_mode = #tpu.pipeline_mode<synchronous>, transform_indices = @transform_2, window_bounds = array<i64: 32, 616>}, {pipeline_mode = #tpu.pipeline_mode<synchronous>, transform_indices = @transform_3, window_bounds = array<i64: 192, 32>}, {pipeline_mode = #tpu.pipeline_mode<synchronous>, transform_indices = @transform_4, window_bounds = array<i64: 1, 452>}, {pipeline_mode = #tpu.pipeline_mode<synchronous>, transform_indices = @transform_5, window_bounds = array<i64: 16, 4>}]} {
    %c0 = arith.constant 0 : index
    %c0_0 = arith.constant 0 : index
    %0 = vector.load %arg1[%c0, %c0_0] : memref<32x32xf32, #tpu.memory_space<vmem>>, vector<32x32xf32>
    %c0_1 = arith.constant 0 : index
    %c0_2 = arith.constant 0 : index
    %1 = vector.load %arg2[%c0_1, %c0_2] : memref<16x16xf32, #tpu.memory_space<vmem>>, vector<16x16xf32>
    %c0_3 = arith.constant 0 : index
    %c0_4 = arith.constant 0 : index
    %2 = vector.load %arg3[%c0_3, %c0_4] : memref<32x616xf32, #tpu.memory_space<vmem>>, vector<32x96xf32>
    %cst = arith.constant dense<0.000000e+00> : vector<32x96xf32>
    %3 = tpu.matmul %0, %2, %cst {dimension_numbers = #tpu.dot_dimension_numbers<[1], [0], [0], [1], [0, 0, 1, 1], [], []>} : vector<32x32xf32>, vector<32x96xf32>, vector<32x96xf32> -> vector<32x96xf32>
    %c0_5 = arith.constant 0 : index
    %c0_6 = arith.constant 0 : index
    %4 = vector.load %arg5[%c0_5, %c0_6] : memref<1x452xf32, #tpu.memory_space<vmem>>, vector<1x96xf32>
    %5 = vector.broadcast %4 : vector<1x96xf32> to vector<32x96xf32>
    %6 = arith.addf %3, %5 : vector<32x96xf32>
    %7 = vector.extract_strided_slice %6 {offsets = [0, 0], sizes = [16, 32], strides = [1, 1]} : vector<32x96xf32> to vector<16x32xf32>
    %8 = vector.extract_strided_slice %6 {offsets = [16, 32], sizes = [16, 64], strides = [1, 1]} : vector<32x96xf32> to vector<16x64xf32>
    %9 = vector.extract_strided_slice %7 {offsets = [0, 0], sizes = [16, 8], strides = [1, 1]} : vector<16x32xf32> to vector<16x8xf32>
    %10 = vector.extract_strided_slice %8 {offsets = [0, 0], sizes = [16, 8], strides = [1, 1]} : vector<16x64xf32> to vector<16x8xf32>
    %11 = vector.extract_strided_slice %8 {offsets = [0, 32], sizes = [16, 8], strides = [1, 1]} : vector<16x64xf32> to vector<16x8xf32>
    %cst_7 = arith.constant dense<0.000000e+00> : vector<16x16xf32>
    %12 = tpu.matmul %9, %10, %cst_7 {dimension_numbers = #tpu.dot_dimension_numbers<[1], [1], [0], [0], [0, 0, 1, 0], [], []>} : vector<16x8xf32>, vector<16x8xf32>, vector<16x16xf32> -> vector<16x16xf32>
    %cst_8 = arith.constant 0.353553385 : f32
    %13 = vector.broadcast %cst_8 : f32 to vector<16x16xf32>
    %14 = arith.mulf %12, %13 : vector<16x16xf32>
    %15 = arith.addf %14, %1 : vector<16x16xf32>
    %cst_9 = arith.constant dense<0xFF800000> : vector<16xf32>
    %16 = vector.multi_reduction <maximumf>, %15, %cst_9 [1] : vector<16x16xf32> to vector<16xf32>
    %17 = vector.shape_cast %16 : vector<16xf32> to vector<16x1xf32>
    %18 = vector.broadcast %17 : vector<16x1xf32> to vector<16x16xf32>
    %19 = arith.subf %15, %18 : vector<16x16xf32>
    %20 = math.exp %19 : vector<16x16xf32>
    %cst_10 = arith.constant dense<0.000000e+00> : vector<16xf32>
    %21 = vector.multi_reduction <add>, %20, %cst_10 [1] : vector<16x16xf32> to vector<16xf32>
    %22 = vector.shape_cast %21 : vector<16xf32> to vector<16x1xf32>
    %23 = tpu.reciprocal %22 {approx = true} : vector<16x1xf32> -> vector<16x1xf32>
    %24 = vector.broadcast %23 : vector<16x1xf32> to vector<16x16xf32>
    %25 = arith.mulf %20, %24 : vector<16x16xf32>
    %cst_11 = arith.constant dense<0.000000e+00> : vector<16x8xf32>
    %26 = tpu.matmul %25, %11, %cst_11 {dimension_numbers = #tpu.dot_dimension_numbers<[1], [0], [0], [1], [0, 0, 1, 1], [], []>} : vector<16x16xf32>, vector<16x8xf32>, vector<16x8xf32> -> vector<16x8xf32>
    %27 = vector.extract_strided_slice %7 {offsets = [0, 8], sizes = [16, 8], strides = [1, 1]} : vector<16x32xf32> to vector<16x8xf32>
    %28 = vector.extract_strided_slice %8 {offsets = [0, 8], sizes = [16, 8], strides = [1, 1]} : vector<16x64xf32> to vector<16x8xf32>
    %29 = vector.extract_strided_slice %8 {offsets = [0, 40], sizes = [16, 8], strides = [1, 1]} : vector<16x64xf32> to vector<16x8xf32>
    %cst_12 = arith.constant dense<0.000000e+00> : vector<16x16xf32>
    %30 = tpu.matmul %27, %28, %cst_12 {dimension_numbers = #tpu.dot_dimension_numbers<[1], [1], [0], [0], [0, 0, 1, 0], [], []>} : vector<16x8xf32>, vector<16x8xf32>, vector<16x16xf32> -> vector<16x16xf32>
    %cst_13 = arith.constant 0.353553385 : f32
    %31 = vector.broadcast %cst_13 : f32 to vector<16x16xf32>
    %32 = arith.mulf %30, %31 : vector<16x16xf32>
    %33 = arith.addf %32, %1 : vector<16x16xf32>
    %cst_14 = arith.constant dense<0xFF800000> : vector<16xf32>
    %34 = vector.multi_reduction <maximumf>, %33, %cst_14 [1] : vector<16x16xf32> to vector<16xf32>
    %35 = vector.shape_cast %34 : vector<16xf32> to vector<16x1xf32>
    %36 = vector.broadcast %35 : vector<16x1xf32> to vector<16x16xf32>
    %37 = arith.subf %33, %36 : vector<16x16xf32>
    %38 = math.exp %37 : vector<16x16xf32>
    %cst_15 = arith.constant dense<0.000000e+00> : vector<16xf32>
    %39 = vector.multi_reduction <add>, %38, %cst_15 [1] : vector<16x16xf32> to vector<16xf32>
    %40 = vector.shape_cast %39 : vector<16xf32> to vector<16x1xf32>
    %41 = tpu.reciprocal %40 {approx = true} : vector<16x1xf32> -> vector<16x1xf32>
    %42 = vector.broadcast %41 : vector<16x1xf32> to vector<16x16xf32>
    %43 = arith.mulf %38, %42 : vector<16x16xf32>
    %cst_16 = arith.constant dense<0.000000e+00> : vector<16x8xf32>
    %44 = tpu.matmul %43, %29, %cst_16 {dimension_numbers = #tpu.dot_dimension_numbers<[1], [0], [0], [1], [0, 0, 1, 1], [], []>} : vector<16x16xf32>, vector<16x8xf32>, vector<16x8xf32> -> vector<16x8xf32>
    %45 = vector.extract_strided_slice %7 {offsets = [0, 16], sizes = [16, 8], strides = [1, 1]} : vector<16x32xf32> to vector<16x8xf32>
    %46 = vector.extract_strided_slice %8 {offsets = [0, 16], sizes = [16, 8], strides = [1, 1]} : vector<16x64xf32> to vector<16x8xf32>
    %47 = vector.extract_strided_slice %8 {offsets = [0, 48], sizes = [16, 8], strides = [1, 1]} : vector<16x64xf32> to vector<16x8xf32>
    %cst_17 = arith.constant dense<0.000000e+00> : vector<16x16xf32>
    %48 = tpu.matmul %45, %46, %cst_17 {dimension_numbers = #tpu.dot_dimension_numbers<[1], [1], [0], [0], [0, 0, 1, 0], [], []>} : vector<16x8xf32>, vector<16x8xf32>, vector<16x16xf32> -> vector<16x16xf32>
    %cst_18 = arith.constant 0.353553385 : f32
    %49 = vector.broadcast %cst_18 : f32 to vector<16x16xf32>
    %50 = arith.mulf %48, %49 : vector<16x16xf32>
    %51 = arith.addf %50, %1 : vector<16x16xf32>
    %cst_19 = arith.constant dense<0xFF800000> : vector<16xf32>
    %52 = vector.multi_reduction <maximumf>, %51, %cst_19 [1] : vector<16x16xf32> to vector<16xf32>
    %53 = vector.shape_cast %52 : vector<16xf32> to vector<16x1xf32>
    %54 = vector.broadcast %53 : vector<16x1xf32> to vector<16x16xf32>
    %55 = arith.subf %51, %54 : vector<16x16xf32>
    %56 = math.exp %55 : vector<16x16xf32>
    %cst_20 = arith.constant dense<0.000000e+00> : vector<16xf32>
    %57 = vector.multi_reduction <add>, %56, %cst_20 [1] : vector<16x16xf32> to vector<16xf32>
    %58 = vector.shape_cast %57 : vector<16xf32> to vector<16x1xf32>
    %59 = tpu.reciprocal %58 {approx = true} : vector<16x1xf32> -> vector<16x1xf32>
    %60 = vector.broadcast %59 : vector<16x1xf32> to vector<16x16xf32>
    %61 = arith.mulf %56, %60 : vector<16x16xf32>
    %cst_21 = arith.constant dense<0.000000e+00> : vector<16x8xf32>
    %62 = tpu.matmul %61, %47, %cst_21 {dimension_numbers = #tpu.dot_dimension_numbers<[1], [0], [0], [1], [0, 0, 1, 1], [], []>} : vector<16x16xf32>, vector<16x8xf32>, vector<16x8xf32> -> vector<16x8xf32>
    %63 = vector.extract_strided_slice %7 {offsets = [0, 24], sizes = [16, 8], strides = [1, 1]} : vector<16x32xf32> to vector<16x8xf32>
    %64 = vector.extract_strided_slice %8 {offsets = [0, 24], sizes = [16, 8], strides = [1, 1]} : vector<16x64xf32> to vector<16x8xf32>
    %65 = vector.extract_strided_slice %8 {offsets = [0, 56], sizes = [16, 8], strides = [1, 1]} : vector<16x64xf32> to vector<16x8xf32>
    %cst_22 = arith.constant dense<0.000000e+00> : vector<16x16xf32>
    %66 = tpu.matmul %63, %64, %cst_22 {dimension_numbers = #tpu.dot_dimension_numbers<[1], [1], [0], [0], [0, 0, 1, 0], [], []>} : vector<16x8xf32>, vector<16x8xf32>, vector<16x16xf32> -> vector<16x16xf32>
    %cst_23 = arith.constant 0.353553385 : f32
    %67 = vector.broadcast %cst_23 : f32 to vector<16x16xf32>
    %68 = arith.mulf %66, %67 : vector<16x16xf32>
    %69 = arith.addf %68, %1 : vector<16x16xf32>
    %cst_24 = arith.constant dense<0xFF800000> : vector<16xf32>
    %70 = vector.multi_reduction <maximumf>, %69, %cst_24 [1] : vector<16x16xf32> to vector<16xf32>
    %71 = vector.shape_cast %70 : vector<16xf32> to vector<16x1xf32>
    %72 = vector.broadcast %71 : vector<16x1xf32> to vector<16x16xf32>
    %73 = arith.subf %69, %72 : vector<16x16xf32>
    %74 = math.exp %73 : vector<16x16xf32>
    %cst_25 = arith.constant dense<0.000000e+00> : vector<16xf32>
    %75 = vector.multi_reduction <add>, %74, %cst_25 [1] : vector<16x16xf32> to vector<16xf32>
    %76 = vector.shape_cast %75 : vector<16xf32> to vector<16x1xf32>
    %77 = tpu.reciprocal %76 {approx = true} : vector<16x1xf32> -> vector<16x1xf32>
    %78 = vector.broadcast %77 : vector<16x1xf32> to vector<16x16xf32>
    %79 = arith.mulf %74, %78 : vector<16x16xf32>
    %cst_26 = arith.constant dense<0.000000e+00> : vector<16x8xf32>
    %80 = tpu.matmul %79, %65, %cst_26 {dimension_numbers = #tpu.dot_dimension_numbers<[1], [0], [0], [1], [0, 0, 1, 1], [], []>} : vector<16x16xf32>, vector<16x8xf32>, vector<16x8xf32> -> vector<16x8xf32>
    %81 = tpu.concatenate %26, %44, %62, %80 in 1 : vector<16x8xf32>, vector<16x8xf32>, vector<16x8xf32>, vector<16x8xf32> -> vector<16x32xf32>
    %c0_27 = arith.constant 0 : index
    %c96 = arith.constant 96 : index
    %82 = vector.load %arg3[%c0_27, %c96] : memref<32x616xf32, #tpu.memory_space<vmem>>, vector<32x32xf32>
    %cst_28 = arith.constant dense<0.000000e+00> : vector<16x32xf32>
    %83 = tpu.matmul %81, %82, %cst_28 {dimension_numbers = #tpu.dot_dimension_numbers<[1], [0], [0], [1], [0, 0, 1, 1], [], []>} : vector<16x32xf32>, vector<32x32xf32>, vector<16x32xf32> -> vector<16x32xf32>
    %c0_29 = arith.constant 0 : index
    %c96_30 = arith.constant 96 : index
    %84 = vector.load %arg5[%c0_29, %c96_30] : memref<1x452xf32, #tpu.memory_space<vmem>>, vector<1x32xf32>
    %85 = vector.broadcast %84 : vector<1x32xf32> to vector<16x32xf32>
    %86 = arith.addf %83, %85 : vector<16x32xf32>
    %87 = vector.extract_strided_slice %0 {offsets = [0, 0], sizes = [16, 32], strides = [1, 1]} : vector<32x32xf32> to vector<16x32xf32>
    %88 = arith.addf %87, %86 : vector<16x32xf32>
    %cst_31 = arith.constant dense<0.000000e+00> : vector<16xf32>
    %89 = vector.multi_reduction <add>, %88, %cst_31 [1] : vector<16x32xf32> to vector<16xf32>
    %90 = vector.shape_cast %89 : vector<16xf32> to vector<16x1xf32>
    %cst_32 = arith.constant 3.125000e-02 : f32
    %91 = vector.broadcast %cst_32 : f32 to vector<16x1xf32>
    %92 = arith.mulf %90, %91 : vector<16x1xf32>
    %93 = arith.mulf %88, %88 : vector<16x32xf32>
    %cst_33 = arith.constant dense<0.000000e+00> : vector<16xf32>
    %94 = vector.multi_reduction <add>, %93, %cst_33 [1] : vector<16x32xf32> to vector<16xf32>
    %95 = vector.shape_cast %94 : vector<16xf32> to vector<16x1xf32>
    %cst_34 = arith.constant 3.125000e-02 : f32
    %96 = vector.broadcast %cst_34 : f32 to vector<16x1xf32>
    %97 = arith.mulf %95, %96 : vector<16x1xf32>
    %98 = arith.mulf %92, %92 : vector<16x1xf32>
    %99 = arith.subf %97, %98 : vector<16x1xf32>
    %100 = vector.broadcast %92 : vector<16x1xf32> to vector<16x32xf32>
    %101 = arith.subf %88, %100 : vector<16x32xf32>
    %cst_35 = arith.constant 9.99999974E-6 : f32
    %102 = vector.broadcast %cst_35 : f32 to vector<16x1xf32>
    %103 = arith.addf %99, %102 : vector<16x1xf32>
    %104 = math.rsqrt %103 : vector<16x1xf32>
    %105 = vector.broadcast %104 : vector<16x1xf32> to vector<16x32xf32>
    %106 = arith.mulf %101, %105 : vector<16x32xf32>
    %c0_36 = arith.constant 0 : index
    %c128 = arith.constant 128 : index
    %107 = vector.load %arg5[%c0_36, %c128] : memref<1x452xf32, #tpu.memory_space<vmem>>, vector<1x32xf32>
    %108 = vector.broadcast %107 : vector<1x32xf32> to vector<16x32xf32>
    %109 = arith.mulf %106, %108 : vector<16x32xf32>
    %c0_37 = arith.constant 0 : index
    %c160 = arith.constant 160 : index
    %110 = vector.load %arg5[%c0_37, %c160] : memref<1x452xf32, #tpu.memory_space<vmem>>, vector<1x32xf32>
    %111 = vector.broadcast %110 : vector<1x32xf32> to vector<16x32xf32>
    %112 = arith.addf %109, %111 : vector<16x32xf32>
    %c0_38 = arith.constant 0 : index
    %c128_39 = arith.constant 128 : index
    %113 = vector.load %arg3[%c0_38, %c128_39] : memref<32x616xf32, #tpu.memory_space<vmem>>, vector<32x192xf32>
    %cst_40 = arith.constant dense<0.000000e+00> : vector<16x192xf32>
    %114 = tpu.matmul %112, %113, %cst_40 {dimension_numbers = #tpu.dot_dimension_numbers<[1], [0], [0], [1], [0, 0, 1, 1], [], []>} : vector<16x32xf32>, vector<32x192xf32>, vector<16x192xf32> -> vector<16x192xf32>
    %c0_41 = arith.constant 0 : index
    %c192 = arith.constant 192 : index
    %115 = vector.load %arg5[%c0_41, %c192] : memref<1x452xf32, #tpu.memory_space<vmem>>, vector<1x192xf32>
    %116 = vector.broadcast %115 : vector<1x192xf32> to vector<16x192xf32>
    %117 = arith.addf %114, %116 : vector<16x192xf32>
    %cst_42 = arith.constant 0.000000e+00 : f32
    %118 = vector.broadcast %cst_42 : f32 to vector<16x192xf32>
    %119 = arith.maximumf %117, %118 : vector<16x192xf32>
    %c0_43 = arith.constant 0 : index
    %c320 = arith.constant 320 : index
    %120 = vector.load %arg3[%c0_43, %c320] : memref<32x616xf32, #tpu.memory_space<vmem>>, vector<32x64xf32>
    %cst_44 = arith.constant dense<0.000000e+00> : vector<16x64xf32>
    %121 = tpu.matmul %112, %120, %cst_44 {dimension_numbers = #tpu.dot_dimension_numbers<[1], [0], [0], [1], [0, 0, 1, 1], [], []>} : vector<16x32xf32>, vector<32x64xf32>, vector<16x64xf32> -> vector<16x64xf32>
    %c0_45 = arith.constant 0 : index
    %c384 = arith.constant 384 : index
    %122 = vector.load %arg5[%c0_45, %c384] : memref<1x452xf32, #tpu.memory_space<vmem>>, vector<1x64xf32>
    %123 = vector.broadcast %122 : vector<1x64xf32> to vector<16x64xf32>
    %124 = arith.addf %121, %123 : vector<16x64xf32>
    %125 = vector.extract_strided_slice %124 {offsets = [0, 0], sizes = [16, 32], strides = [1, 1]} : vector<16x64xf32> to vector<16x32xf32>
    %cst_46 = arith.constant dense<0xFF800000> : vector<16xf32>
    %126 = vector.multi_reduction <maximumf>, %125, %cst_46 [1] : vector<16x32xf32> to vector<16xf32>
    %127 = vector.shape_cast %126 : vector<16xf32> to vector<16x1xf32>
    %128 = vector.broadcast %127 : vector<16x1xf32> to vector<16x32xf32>
    %129 = arith.subf %125, %128 : vector<16x32xf32>
    %130 = math.exp %129 : vector<16x32xf32>
    %cst_47 = arith.constant dense<0.000000e+00> : vector<16xf32>
    %131 = vector.multi_reduction <add>, %130, %cst_47 [1] : vector<16x32xf32> to vector<16xf32>
    %132 = vector.shape_cast %131 : vector<16xf32> to vector<16x1xf32>
    %133 = tpu.reciprocal %132 {approx = true} : vector<16x1xf32> -> vector<16x1xf32>
    %134 = vector.broadcast %133 : vector<16x1xf32> to vector<16x32xf32>
    %135 = arith.mulf %130, %134 : vector<16x32xf32>
    %136 = vector.extract_strided_slice %124 {offsets = [0, 32], sizes = [16, 32], strides = [1, 1]} : vector<16x64xf32> to vector<16x32xf32>
    %cst_48 = arith.constant dense<0xFF800000> : vector<16xf32>
    %137 = vector.multi_reduction <maximumf>, %136, %cst_48 [1] : vector<16x32xf32> to vector<16xf32>
    %138 = vector.shape_cast %137 : vector<16xf32> to vector<16x1xf32>
    %139 = vector.broadcast %138 : vector<16x1xf32> to vector<16x32xf32>
    %140 = arith.subf %136, %139 : vector<16x32xf32>
    %141 = math.exp %140 : vector<16x32xf32>
    %cst_49 = arith.constant dense<0.000000e+00> : vector<16xf32>
    %142 = vector.multi_reduction <add>, %141, %cst_49 [1] : vector<16x32xf32> to vector<16xf32>
    %143 = vector.shape_cast %142 : vector<16xf32> to vector<16x1xf32>
    %144 = tpu.reciprocal %143 {approx = true} : vector<16x1xf32> -> vector<16x1xf32>
    %145 = vector.broadcast %144 : vector<16x1xf32> to vector<16x32xf32>
    %146 = arith.mulf %141, %145 : vector<16x32xf32>
    %147 = tpu.concatenate %135, %146 in 0 : vector<16x32xf32>, vector<16x32xf32> -> vector<32x32xf32>
    %c0_50 = arith.constant 0 : index
    %c392 = arith.constant 392 : index
    %148 = vector.load %arg3[%c0_50, %c392] : memref<32x616xf32, #tpu.memory_space<vmem>>, vector<32x224xf32>
    %cst_51 = arith.constant dense<0.000000e+00> : vector<32x224xf32>
    %149 = tpu.matmul %147, %148, %cst_51 {dimension_numbers = #tpu.dot_dimension_numbers<[1], [0], [0], [1], [0, 0, 1, 1], [], []>} : vector<32x32xf32>, vector<32x224xf32>, vector<32x224xf32> -> vector<32x224xf32>
    %150 = vector.extract_strided_slice %149 {offsets = [0, 0], sizes = [32, 192], strides = [1, 1]} : vector<32x224xf32> to vector<32x192xf32>
    %151 = vector.extract_strided_slice %149 {offsets = [0, 192], sizes = [32, 32], strides = [1, 1]} : vector<32x224xf32> to vector<32x32xf32>
    %152 = tpu.concatenate %119, %119 in 0 : vector<16x192xf32>, vector<16x192xf32> -> vector<32x192xf32>
    %153 = arith.mulf %152, %150 : vector<32x192xf32>
    %c0_52 = arith.constant 0 : index
    %c0_53 = arith.constant 0 : index
    %154 = vector.load %arg4[%c0_52, %c0_53] : memref<192x32xf32, #tpu.memory_space<vmem>>, vector<192x32xf32>
    %cst_54 = arith.constant dense<0.000000e+00> : vector<32x32xf32>
    %155 = tpu.matmul %153, %154, %cst_54 {dimension_numbers = #tpu.dot_dimension_numbers<[1], [0], [0], [1], [0, 0, 1, 1], [], []>} : vector<32x192xf32>, vector<192x32xf32>, vector<32x32xf32> -> vector<32x32xf32>
    %156 = arith.addf %155, %151 : vector<32x32xf32>
    %c0_55 = arith.constant 0 : index
    %c384_56 = arith.constant 384 : index
    %157 = vector.load %arg3[%c0_55, %c384_56] : memref<32x616xf32, #tpu.memory_space<vmem>>, vector<32x8xf32>
    %cst_57 = arith.constant dense<0.000000e+00> : vector<32x8xf32>
    %158 = tpu.matmul %156, %157, %cst_57 {dimension_numbers = #tpu.dot_dimension_numbers<[1], [0], [0], [1], [0, 0, 1, 1], [], []>} : vector<32x32xf32>, vector<32x8xf32>, vector<32x8xf32> -> vector<32x8xf32>
    %159 = vector.extract_strided_slice %158 {offsets = [0, 0], sizes = [16, 4], strides = [1, 1]} : vector<32x8xf32> to vector<16x4xf32>
    %160 = vector.extract_strided_slice %158 {offsets = [16, 4], sizes = [16, 4], strides = [1, 1]} : vector<32x8xf32> to vector<16x4xf32>
    %161 = arith.addf %159, %160 : vector<16x4xf32>
    %c0_58 = arith.constant 0 : index
    %c448 = arith.constant 448 : index
    %162 = vector.load %arg5[%c0_58, %c448] : memref<1x452xf32, #tpu.memory_space<vmem>>, vector<1x4xf32>
    %163 = vector.broadcast %162 : vector<1x4xf32> to vector<16x4xf32>
    %164 = arith.addf %161, %163 : vector<16x4xf32>
    %165 = tpu.iota {dimensions = array<i32: 1>} : vector<16x4xi32>
    %cst_59 = arith.constant 0.000000e+00 : f32
    %166 = vector.broadcast %cst_59 : f32 to vector<16x4xf32>
    %167 = arith.subf %166, %164 : vector<16x4xf32>
    %168 = math.exp %167 : vector<16x4xf32>
    %cst_60 = arith.constant 1.000000e+00 : f32
    %169 = vector.broadcast %cst_60 : f32 to vector<16x4xf32>
    %170 = arith.addf %169, %168 : vector<16x4xf32>
    %171 = tpu.reciprocal %170 {approx = true} : vector<16x4xf32> -> vector<16x4xf32>
    %c3_i32 = arith.constant 3 : i32
    %172 = vector.broadcast %c3_i32 : i32 to vector<16x4xi32>
    %173 = arith.cmpi eq, %165, %172 : vector<16x4xi32>
    %174 = arith.select %173, %171, %164 : vector<16x4xi1>, vector<16x4xf32>
    %c0_61 = arith.constant 0 : index
    %c0_62 = arith.constant 0 : index
    %175 = vector.load %arg6[%c0_61, %c0_62] : memref<16x4xf32, #tpu.memory_space<vmem>>, vector<16x4xf32>
    tpu.vector_store %arg6[%c0_61, %c0_62], %174 {strides = array<i32>} : memref<16x4xf32, #tpu.memory_space<vmem>>, vector<16x4xf32>,
    return
  }
  func.func @transform_0(%arg0: i32) -> (i32, i32) {
    %c0_i32 = arith.constant 0 : i32
    %c0_i32_0 = arith.constant 0 : i32
    %c0_i32_1 = arith.constant 0 : i32
    return %c0_i32, %c0_i32_0 : i32, i32
  }
  func.func @transform_1(%arg0: i32) -> (i32, i32) {
    %c0_i32 = arith.constant 0 : i32
    %c0_i32_0 = arith.constant 0 : i32
    %c0_i32_1 = arith.constant 0 : i32
    return %c0_i32, %c0_i32_0 : i32, i32
  }
  func.func @transform_2(%arg0: i32) -> (i32, i32) {
    %c0_i32 = arith.constant 0 : i32
    %c0_i32_0 = arith.constant 0 : i32
    %c0_i32_1 = arith.constant 0 : i32
    return %c0_i32, %c0_i32_0 : i32, i32
  }
  func.func @transform_3(%arg0: i32) -> (i32, i32) {
    %c0_i32 = arith.constant 0 : i32
    %c0_i32_0 = arith.constant 0 : i32
    %c0_i32_1 = arith.constant 0 : i32
    return %c0_i32, %c0_i32_0 : i32, i32
  }
  func.func @transform_4(%arg0: i32) -> (i32, i32) {
    %c0_i32 = arith.constant 0 : i32
    %c0_i32_0 = arith.constant 0 : i32
    %c0_i32_1 = arith.constant 0 : i32
    return %c0_i32, %c0_i32_0 : i32, i32
  }
  func.func @transform_5(%arg0: i32) -> (i32, i32) {
    %c0_i32 = arith.constant 0 : i32
    %c0_i32_0 = arith.constant 0 : i32
    %c0_i32_1 = arith.constant 0 : i32
    return %c0_i32, %c0_i32_0 : i32, i32
  }
}

</mosaic_0001>

<bundles_post_ra>
// kernel: tpu_custom_call.1
= control target key start
LH: loop header
LB: loop body
LE: loop exit
PB: predicated region body
PF: predicated region fallthrough
CT: control target
= control target key end

     0   :  { %vm37_vm0 = vcmask 261120   ;;  %vm141_vm1 = vcmask 64512   ;;  %vm231_vm3 = vcmask 130048   ;;  %s2325_s15 = smov 64   ;;  %s2326_s16 = smov 88   ;;  %vm981_vm4 = vcmask 195584   ;;  %s2811_s2 = inlined_call_operand.vmem [shape: f32[32,616], index: 2, kind: input, shape index: {}]   ;;  %s2812_s0 = inlined_call_operand.vmem [shape: f32[32,32], index: 0, kind: input, shape index: {}]   ;;  %s2813_s4 = inlined_call_operand.vmem [shape: f32[1,452], index: 4, kind: input, shape index: {}]   ;;  %s2814_s1 = inlined_call_operand.vmem [shape: f32[16,16], index: 1, kind: input, shape index: {}]   ;;  %s2815_s3 = inlined_call_operand.vmem [shape: f32[192,32], index: 3, kind: input, shape index: {}]   ;;  %s2816_s5 = inlined_call_operand.vmem [shape: f32[16,4], index: 5, kind: output, shape index: {}]  }
   0x1   :  { %v2375_v0 = vld [vmem:[%s2811_s2] sm:$0xff]  ;;  %v2380_v1 = vld [vmem:[%s2811_s2 + $0x28] sm:$0xff]  ;;  %v2385_v2 = vld [vmem:[%s2811_s2 + $0x50] sm:$0xff]  ;;  %s2328_s17 = smov 120   ;;  %s2329_s18 = smov 112   ;;  %vm1363_vm5 = vcmask 523520  }
   0x2   :  { %v2224_v3 = vpack.i.bf16 %v2380_v1, %v2375_v0  ;;  %v2042_v4 = vpack.c.bf16 %v2380_v1, %v2375_v0  ;;  %v2394_v5 = vld [vmem:[%s2811_s2 + $0x78] sm:$0xff]  ;;  %v2399_v6 = vld [vmem:[%s2812_s0] sm:$0xff]  ;;  %v2408_v8 = vld [vmem:[%s2812_s0 + $0x8] sm:$0xff]  ;;  %s2330_s19 = smov 56   ;;  %s2331_s20 = smov 48   ;;  %vm1432_vm6 = vcmask 982016  }
   0x3   :  { %v2046_v7 = vpack.c.bf16 %v2394_v5, %v2385_v2  ;;  %1944 = vmatprep.mubr.msk.f32.mxu1 %vm37_vm0, %v2399_v6  ;;  %v22_v9 = vld [vmem:[%s2812_s0 + $0x10] sm:$0xff]  ;;  %v23_v10 = vld [vmem:[%s2812_s0 + $0x18] sm:$0xff]  ;;  %v2423_v11 = vld [vmem:[%s2813_s4] ss:$0 sm:$0xff]  ;;  %s2324_s0 = smov 96   ;;  %s2332_s21 = smov 104  }
   0x4   :  { %2043 = vmatprep.subr.bf16.mxu1 %v2042_v4  ;;  %vm2438_vm2 = vmpackc.low %vm141_vm1, %vm141_vm1  ;;  %v2454_v27 = vld [vmem:[%s2814_s1 + $0x8] sm:$0xff]  ;;  %v2459_v30 = vld [vmem:[%s2814_s1] sm:$0xff]  ;;  %s2327_s1 = smov 80   ;;  %s2333_s22 = smov 72   ;;  %vm1152_vm7 = vcmask 523264   ;;  %vm1820_vm9 = vcmask 31744  }
   0x5   :  { %2045 = vmatpush3.bf16.msra.mxu1 %v2042_v4  ;;  %s2334_s23 = smov 32   ;;  %s2335_s24 = smov 40  }
   0x6   :  { %2047 = vmatprep.subr.bf16.mxu1 %v2046_v7  ;;  %s2336_s25 = smov 8   ;;  %s2337_s26 = smov 16  }
   0x7   :  { %s2338_s27 = smov 24  }
   0x9   :  { %2049 = vmatpush3.bf16.msra.mxu1 %v2046_v7 }
   0xc   :  { %1945 = vmatmul.mubr.msk.f32.vlgmr.msra.gmra.mrb[0].mxu1 %vm37_vm0, %v2408_v8 }
   0xd   :  { %1947 = vmatprep.mubr.msk.f32.mxu1 %vm37_vm0, %v22_v9 }
  0x10   :  { %1948 = vmatmul.mubr.msk.f32.gmra.mrb[2].mxu1 %vm37_vm0, %v23_v10 }
  0xdf   :  { %v1946_v12 = vpop.f32.mrb[0].mxu1 }
  0xe0   :  { %v116_v13 = vpop.f32.mrb[1].mxu1  ;;  %v2447_v25 = vadd.f32 %v1946_v12, %v2423_v11 }
  0xe1   :  { %v2426_v14 = vadd.f32 %v2423_v11, %v116_v13 }
  0xe3   :  { %v1949_v15 = vpop.f32.mrb[2].mxu1  ;;  %1954 = vmatprep.mubr.msk.f32.mxu1 %vm141_vm1, %v2426_v14 }
  0xe4   :  { %v132_v16 = vadd.f32 %v1949_v15, %v2423_v11  ;;  %v126_v17 = vpop.f32.mrb[3].mxu1 }
  0xe5   :  { %v127_v18 = vadd.f32 %v2423_v11, %v126_v17 }
  0xe7   :  { %v2432_v19 = vpack.i.bf16 %v132_v16, %v127_v18 }
  0xe9   :  { %2185 = vrot.lane.b32.xlu0 %v2432_v19, %s2324_s0 }
 0x15b   :  { %v2186_v20 = vpop.permute.xlu0 %2185 }
 0x15c   :  { %v2188_v21 = vunpack.i.h.bf16 %v2186_v20  ;;  %v2187_v22 = vunpack.i.l.bf16 %v2186_v20 }
 0x15e   :  { %v2050_v24 = vpack.c.bf16 %v2188_v21, %v2187_v22 }
 0x160   :  { %2052 = vmatprep.subr.msk.bf16.mxu1 %vm2438_vm2, %v2050_v24 }
 0x161   :  { %2055 = vmatpush3.bf16.xpose.msk.msra.mxu1 %vm2438_vm2, %v2050_v24 }
 0x168   :  { %1955 = vmatmul.mubr.msk.f32.vlgmr.msra.gmra.mrb[4].mxu1 %vm141_vm1, %v2447_v25 }
 0x23b   :  { %v1956_v26 = vpop.f32.mrb[4].mxu1 }
 0x23c   :  { %v228_v28 = vmul.f32 0.35355338, %v1956_v26  ;;  %v218_v29 = vpop.f32.mrb[5].mxu1 }
 0x23d   :  { %v227_v31 = vmul.f32 0.35355338, %v218_v29 }
 0x23e   :  { %v230_v32 = vadd.f32 %v228_v28, %v2454_v27 }
 0x23f   :  { %v229_v33 = vadd.f32 %v227_v31, %v2459_v30 }
 0x240   :  { %v235_v34 = vsel %vm231_vm3, %v230_v32, -inf }
 0x241   :  { %236 = vmax.xlane.f32.xlu1 %v235_v34  ;;  %v232_v35 = vsel %vm231_vm3, %v229_v33, -inf }
 0x242   :  { %233 = vmax.xlane.f32.xlu0 %v232_v35 }
 0x252   :  { %2190 = vrot.lane.b32.xlu1 %v2432_v19, %s2325_s15 }
 0x256   :  { %2195 = vrot.lane.b32.xlu1 %v2432_v19, %s2326_s16 }
 0x258   :  { %2200 = vrot.lane.b32.xlu0 %v2432_v19, %s2327_s1 }
 0x25a   :  { %341 = vrot.lane.b32.xlu1 %v2426_v14, %s2328_s17 }
 0x2ce   :  { %v237_v36 = vpop.xlane.xlu1 %236 }
 0x2cf   :  { %v239_v37 = vsub.f32 %v230_v32, %v237_v36  ;;  %v234_v38 = vpop.xlane.xlu0 %233 }
 0x2d0   :  { %v238_v39 = vsub.f32 %v229_v33, %v234_v38 }
 0x2d1   :  { %v242_v40 = vmul.f32 1.442695, %v239_v37 }
 0x2d2   :  { %v240_v41 = vmul.f32 1.442695, %v238_v39  ;;  %v2191_v42 = vpop.permute.xlu1 %2190 }
 0x2d3   :  { %2264 = vpow2.f32 %v242_v40  ;;  %v2193_v43 = vunpack.i.h.bf16 %v2191_v42  ;;  %v2192_v44 = vunpack.i.l.bf16 %v2191_v42  ;;  %v2201_v45 = vpop.permute.xlu0 %2200 }
 0x2d4   :  { %v2203_v46 = vunpack.i.h.bf16 %v2201_v45  ;;  %v2202_v47 = vunpack.i.l.bf16 %v2201_v45  ;;  %2266 = vpow2.f32 %v240_v41 }
 0x2d5   :  { %v2056_v48 = vpack.c.bf16 %v2193_v43, %v2192_v44 }
 0x2d6   :  { %v2196_v49 = vpop.permute.xlu1 %2195  ;;  %v2070_v50 = vpack.c.bf16 %v2203_v46, %v2202_v47 }
 0x2d7   :  { %v2198_v51 = vunpack.i.h.bf16 %v2196_v49  ;;  %v2197_v52 = vunpack.i.l.bf16 %v2196_v49  ;;  %2057 = vmatprep.subr.bf16.mxu1 %v2056_v48 }
 0x2d8   :  { %2059 = vmatpush3.bf16.msra.mxu1 %v2056_v48  ;;  %2072 = vmatprep.subr.msk.bf16.mxu0 %vm2438_vm2, %v2070_v50 }
 0x2d9   :  { %v2060_v53 = vpack.c.bf16 %v2198_v51, %v2197_v52  ;;  %2075 = vmatpush3.bf16.xpose.msk.msra.mxu0 %vm2438_vm2, %v2070_v50 }
 0x2da   :  { %v342_v58 = vpop.permute.xlu1 %341 }
 0x2db   :  { %2062 = vmatprep.subr.msk.bf16.mxu1 %vm2438_vm2, %v2060_v53 }
 0x2dd   :  { %v2265_v54 = vpop.eup %2264 }
 0x2de   :  { %v247_v55 = vsel %vm231_vm3, %v2265_v54, 0.0  ;;  %v2267_v56 = vpop.eup %2266 }
 0x2df   :  { %248 = vadd.xlane.f32.xlu1 %v247_v55  ;;  %v244_v57 = vsel %vm231_vm3, %v2267_v56, 0.0 }
 0x2e3   :  { %245 = vadd.xlane.f32.xlu1 %v244_v57 }
 0x2f4   :  { %343 = vrot.lane.b32.xlu1 %v2447_v25, %s2328_s17 }
 0x2f8   :  { %545 = vrot.lane.b32.xlu1 %v2426_v14, %s2329_s18 }
 0x2fc   :  { %547 = vrot.lane.b32.xlu1 %v2447_v25, %s2329_s18 }
 0x36c   :  { %v249_v59 = vpop.xlane.xlu1 %248 }
 0x36d   :  { %2268 = vrcp.f32 %v249_v59 }
 0x370   :  { %v246_v60 = vpop.xlane.xlu1 %245 }
 0x371   :  { %2270 = vrcp.f32 %v246_v60 }
 0x374   :  { %v344_v61 = vpop.permute.xlu1 %343 }
 0x377   :  { %v2269_v63 = vpop.eup %2268 }
 0x378   :  { %v546_v62 = vpop.permute.xlu1 %545  ;;  %v253_v10 = vmul.f32 %v2269_v63, %v2265_v54 }
 0x379   :  { %1982 = vmatprep.mubr.msk.f32.mxu0 %vm141_vm1, %v546_v62 }
 0x37b   :  { %v2271_v4 = vpop.eup %2270 }
 0x37c   :  { %v548_v7 = vpop.permute.xlu1 %547  ;;  %v252_v9 = vmul.f32 %v2271_v4, %v2267_v56 }
 0x37d   :  { %1983 = vmatmul.mubr.msk.f32.vlgmr.msra.gmra.mrb[0].mxu0 %vm141_vm1, %v548_v7 }
 0x37e   :  { %1961 = vmatprep.mubr.msk.f32.mxu1 %vm231_vm3, %v252_v9 }
 0x37f   :  { %1962 = vmatmul.mubr.msk.f32.vlgmr.msra.gmra.mrb[6].mxu1 %vm231_vm3, %v253_v10 }
 0x380   :  { %2065 = vmatpush3.bf16.xpose.msk.msra.mxu1 %vm2438_vm2, %v2060_v53  ;;  %1968 = vmatprep.mubr.msk.f32.mxu1 %vm141_vm1, %v342_v58 }
 0x387   :  { %1969 = vmatmul.mubr.msk.f32.vlgmr.msra.gmra.mrb[8].mxu1 %vm141_vm1, %v344_v61 }
 0x450   :  { %v1984_v12 = vpop.f32.mrb[0].mxu0 }
 0x451   :  { %v627_v13 = vpop.f32.mrb[1].mxu0  ;;  %v637_v18 = vmul.f32 0.35355338, %v1984_v12 }
 0x452   :  { %v2491_v15 = vpop.f32.mrb[6].mxu1  ;;  %v636_v22 = vmul.f32 0.35355338, %v627_v13 }
 0x453   :  { %v2493_v16 = vpop.f32.mrb[7].mxu1  ;;  %v639_v31 = vadd.f32 %v637_v18, %v2454_v27 }
 0x454   :  { %v638_v33 = vadd.f32 %v636_v22, %v2459_v30 }
 0x455   :  { %v643_v34 = vsel %vm231_vm3, %v639_v31, -inf }
 0x456   :  { %v640_v35 = vsel %vm231_vm3, %v638_v33, -inf }
 0x45a   :  { %v1970_v17 = vpop.f32.mrb[8].mxu1 }
 0x45b   :  { %v433_v20 = vmul.f32 0.35355338, %v1970_v17  ;;  %v423_v21 = vpop.f32.mrb[9].mxu1 }
 0x45c   :  { %v432_v24 = vmul.f32 0.35355338, %v423_v21 }
 0x45d   :  { %v435_v26 = vadd.f32 %v433_v20, %v2454_v27 }
 0x45e   :  { %v434_v28 = vadd.f32 %v432_v24, %v2459_v30 }
 0x45f   :  { %v439_v29 = vsel %vm231_vm3, %v435_v26, -inf }
 0x460   :  { %440 = vmax.xlane.f32.xlu0 %v439_v29  ;;  %v436_v32 = vsel %vm231_vm3, %v434_v28, -inf }
 0x461   :  { %437 = vmax.xlane.f32.xlu1 %v436_v32 }
 0x464   :  { %644 = vmax.xlane.f32.xlu0 %v643_v34 }
 0x465   :  { %641 = vmax.xlane.f32.xlu1 %v640_v35 }
 0x4ed   :  { %v441_v36 = vpop.xlane.xlu0 %440 }
 0x4ee   :  { %v438_v37 = vpop.xlane.xlu1 %437  ;;  %v443_v38 = vsub.f32 %v435_v26, %v441_v36 }
 0x4ef   :  { %v442_v52 = vsub.f32 %v434_v28, %v438_v37 }
 0x4f0   :  { %v446_v43 = vmul.f32 1.442695, %v443_v38 }
 0x4f1   :  { %v645_v39 = vpop.xlane.xlu0 %644  ;;  %v444_v53 = vmul.f32 1.442695, %v442_v52 }
 0x4f2   :  { %v647_v40 = vsub.f32 %v639_v31, %v645_v39  ;;  %v642_v41 = vpop.xlane.xlu1 %641 }
 0x4f3   :  { %v646_v42 = vsub.f32 %v638_v33, %v642_v41 }
 0x4f4   :  { %v650_v44 = vmul.f32 1.442695, %v647_v40 }
 0x4f5   :  { %v648_v45 = vmul.f32 1.442695, %v646_v42 }
 0x4f6   :  { %2272 = vpow2.f32 %v650_v44 }
 0x4f7   :  { %2274 = vpow2.f32 %v648_v45 }
 0x4f8   :  { %2276 = vpow2.f32 %v446_v43 }
 0x4f9   :  { %2278 = vpow2.f32 %v444_v53 }
 0x500   :  { %v2273_v46 = vpop.eup %2272 }
 0x501   :  { %v2275_v47 = vpop.eup %2274  ;;  %v655_v48 = vsel %vm231_vm3, %v2273_v46, 0.0 }
 0x502   :  { %v2277_v49 = vpop.eup %2276  ;;  %656 = vadd.xlane.f32.xlu0 %v655_v48  ;;  %v652_v50 = vsel %vm231_vm3, %v2275_v47, 0.0 }
 0x503   :  { %653 = vadd.xlane.f32.xlu1 %v652_v50  ;;  %v451_v51 = vsel %vm231_vm3, %v2277_v49, 0.0  ;;  %v2279_v54 = vpop.eup %2278 }
 0x504   :  { %v448_v55 = vsel %vm231_vm3, %v2279_v54, 0.0 }
 0x506   :  { %452 = vadd.xlane.f32.xlu0 %v451_v51  ;;  %v2229_v51 = vpack.i.bf16 %v2394_v5, %v2385_v2 }
 0x514   :  { %2205 = vrot.lane.b32.xlu1 %v2432_v19, %s2330_s19 }
 0x51c   :  { %2210 = vrot.lane.b32.xlu0 %v2432_v19, %s2331_s20 }
 0x520   :  { %751 = vrot.lane.b32.xlu0 %v2447_v25, %s2332_s21 }
 0x538   :  { %449 = vadd.xlane.f32.xlu1 %v448_v55 }
 0x549   :  { %2215 = vrot.lane.b32.xlu1 %v2432_v19, %s2333_s22 }
 0x54d   :  { %749 = vrot.lane.b32.xlu1 %v2426_v14, %s2332_s21 }
 0x58f   :  { %v657_v56 = vpop.xlane.xlu0 %656 }
 0x590   :  { %v654_v57 = vpop.xlane.xlu1 %653 }
 0x591   :  { %2280 = vrcp.f32 %v654_v57 }
 0x593   :  { %v453_v58 = vpop.xlane.xlu0 %452 }
 0x594   :  { %v2206_v59 = vpop.permute.xlu1 %2205  ;;  %2282 = vrcp.f32 %v453_v58 }
 0x595   :  { %v2208_v60 = vunpack.i.h.bf16 %v2206_v59  ;;  %v2207_v61 = vunpack.i.l.bf16 %v2206_v59 }
 0x597   :  { %v2066_v62 = vpack.c.bf16 %v2208_v60, %v2207_v61  ;;  %v2211_v25 = vpop.permute.xlu0 %2210 }
 0x598   :  { %v2213_v63 = vunpack.i.h.bf16 %v2211_v25  ;;  %v2212_v4 = vunpack.i.l.bf16 %v2211_v25 }
 0x599   :  { %2067 = vmatprep.subr.bf16.mxu1 %v2066_v62 }
 0x59a   :  { %v2076_v7 = vpack.c.bf16 %v2213_v63, %v2212_v4  ;;  %2069 = vmatpush3.bf16.msra.mxu1 %v2066_v62 }
 0x59b   :  { %v2281_v10 = vpop.eup %2280  ;;  %v752_v31 = vpop.permute.xlu0 %751 }
 0x59c   :  { %2077 = vmatprep.subr.bf16.mxu1 %v2076_v7  ;;  %v660_v24 = vmul.f32 %v2281_v10, %v2275_v47 }
 0x59e   :  { %v2283_v12 = vpop.eup %2282 }
 0x59f   :  { %v457_v21 = vmul.f32 %v2283_v12, %v2277_v49 }
 0x5c5   :  { %v450_v9 = vpop.xlane.xlu1 %449 }
 0x5c6   :  { %2284 = vrcp.f32 %v450_v9 }
 0x5c7   :  { %2286 = vrcp.f32 %v657_v56 }
 0x5c9   :  { %v2216_v14 = vpop.permute.xlu1 %2215 }
 0x5ca   :  { %v2218_v17 = vunpack.i.h.bf16 %v2216_v14  ;;  %v2217_v18 = vunpack.i.l.bf16 %v2216_v14 }
 0x5cc   :  { %v2080_v26 = vpack.c.bf16 %v2218_v17, %v2217_v18 }
 0x5cd   :  { %v750_v29 = vpop.permute.xlu1 %749 }
 0x5d0   :  { %v2285_v13 = vpop.eup %2284 }
 0x5d1   :  { %v456_v20 = vmul.f32 %v2285_v13, %v2279_v54  ;;  %v2287_v22 = vpop.eup %2286 }
 0x5d2   :  { %v661_v28 = vmul.f32 %v2287_v22, %v2273_v46 }
 0x5d3   :  { %1975 = vmatprep.mubr.msk.f32.mxu1 %vm231_vm3, %v456_v20 }
 0x5d4   :  { %1976 = vmatmul.mubr.msk.f32.vlgmr.msra.gmra.mrb[10].mxu1 %vm231_vm3, %v457_v21 }
 0x5d5   :  { %2079 = vmatpush3.bf16.msra.mxu1 %v2076_v7  ;;  %1989 = vmatprep.mubr.msk.f32.mxu1 %vm231_vm3, %v660_v24 }
 0x5d6   :  { %2082 = vmatprep.subr.msk.bf16.mxu1 %vm2438_vm2, %v2080_v26 }
 0x5d8   :  { %1990 = vmatmul.mubr.msk.f32.vlgmr.msra.gmra.mrb[12].mxu1 %vm231_vm3, %v661_v28 }
 0x5d9   :  { %1996 = vmatprep.mubr.msk.f32.mxu1 %vm141_vm1, %v750_v29 }
 0x5de   :  { %2085 = vmatpush3.bf16.xpose.msk.msra.mxu1 %vm2438_vm2, %v2080_v26 }
 0x5e5   :  { %1997 = vmatmul.mubr.msk.f32.vlgmr.msra.gmra.mrb[14].mxu1 %vm141_vm1, %v752_v31 }
 0x6a7   :  { %v1977_v32 = vpop.f32.mrb[10].mxu1 }
 0x6a8   :  { %v536_v33 = vpop.f32.mrb[11].mxu1 }
 0x6ab   :  { %v1991_v34 = vpop.f32.mrb[12].mxu1 }
 0x6ac   :  { %v740_v35 = vpop.f32.mrb[13].mxu1 }
 0x6b8   :  { %v1998_v36 = vpop.f32.mrb[14].mxu1 }
 0x6b9   :  { %v841_v37 = vmul.f32 0.35355338, %v1998_v36  ;;  %v831_v38 = vpop.f32.mrb[15].mxu1  ;;  %v1135_v36 = vld [vmem:[%s2811_s2 + $0x60] sm:$0xff] }
 0x6ba   :  { %v840_v39 = vmul.f32 0.35355338, %v831_v38 }
 0x6bb   :  { %v843_v40 = vadd.f32 %v841_v37, %v2454_v27  ;;  %v1137_v37 = vld [vmem:[%s2811_s2 + $0x88] sm:$0xff] }
 0x6bc   :  { %v842_v41 = vadd.f32 %v840_v39, %v2459_v30  ;;  %v2239_v38 = vpack.i.bf16 %v1137_v37, %v1135_v36  ;;  %v1131_v39 = vld [vmem:[%s2811_s2 + $0x10] sm:$0xff] }
 0x6bd   :  { %v847_v42 = vsel %vm231_vm3, %v843_v40, -inf }
 0x6be   :  { %848 = vmax.xlane.f32.xlu0 %v847_v42  ;;  %v844_v23 = vsel %vm231_vm3, %v842_v41, -inf  ;;  %v1858_v42 = vld [vmem:[%s2813_s4 + $0x1] ss:$0 sm:$0xff] }
 0x6bf   :  { %845 = vmax.xlane.f32.xlu1 %v844_v23 }
 0x74b   :  { %v849_v43 = vpop.xlane.xlu0 %848 }
 0x74c   :  { %v851_v44 = vsub.f32 %v843_v40, %v849_v43  ;;  %v846_v45 = vpop.xlane.xlu1 %845  ;;  %v1133_v40 = vld [vmem:[%s2811_s2 + $0x38] sm:$0xff]  ;;  %v1130_v43 = vld [vmem:[%s2811_s2 + $0x8] sm:$0xff] }
 0x74d   :  { %v850_v46 = vsub.f32 %v842_v41, %v846_v45  ;;  %v2234_v41 = vpack.i.bf16 %v1133_v40, %v1131_v39  ;;  %v2098_v23 = vpack.c.bf16 %v1133_v40, %v1131_v39 }
 0x74e   :  { %v854_v47 = vmul.f32 1.442695, %v851_v44  ;;  %v1132_v44 = vld [vmem:[%s2811_s2 + $0x30] sm:$0xff] }
 0x74f   :  { %v852_v48 = vmul.f32 1.442695, %v850_v46  ;;  %v2100_v45 = vpack.c.bf16 %v1132_v44, %v1130_v43  ;;  %v2102_v46 = vpack.c.bf16 %v1137_v37, %v1135_v36 }
 0x750   :  { %2288 = vpow2.f32 %v854_v47  ;;  %v1134_v47 = vld [vmem:[%s2811_s2 + $0x58] sm:$0xff] }
 0x751   :  { %2290 = vpow2.f32 %v852_v48  ;;  %v1136_v48 = vld [vmem:[%s2811_s2 + $0x80] sm:$0xff] }
 0x75a   :  { %v2289_v49 = vpop.eup %2288 }
 0x75b   :  { %v2291_v50 = vpop.eup %2290  ;;  %v859_v27 = vsel %vm231_vm3, %v2289_v49, 0.0 }
 0x75c   :  { %860 = vadd.xlane.f32.xlu1 %v859_v27  ;;  %v856_v30 = vsel %vm231_vm3, %v2291_v50, 0.0 }
 0x75d   :  { %857 = vadd.xlane.f32.xlu0 %v856_v30 }
 0x76d   :  { %2225 = vrot.lane.b32.xlu1 %v2224_v3, %s2334_s23 }
 0x771   :  { %2230 = vrot.lane.b32.xlu1 %v2229_v51, %s2334_s23 }
 0x773   :  { %2220 = vrot.lane.b32.xlu0 %v2432_v19, %s2335_s24 }
 0x775   :  { %957 = vrot.lane.b32.xlu1 %v1977_v32, %s2336_s25 }
 0x777   :  { %955 = vrot.lane.b32.xlu0 %v536_v33, %s2336_s25 }
 0x779   :  { %965 = vrot.lane.b32.xlu1 %v1991_v34, %s2337_s26 }
 0x77b   :  { %963 = vrot.lane.b32.xlu0 %v740_v35, %s2337_s26 }
 0x7e9   :  { %v861_v52 = vpop.xlane.xlu1 %860 }
 0x7ea   :  { %2292 = vrcp.f32 %v861_v52  ;;  %v858_v53 = vpop.xlane.xlu0 %857 }
 0x7eb   :  { %2294 = vrcp.f32 %v858_v53 }
 0x7ed   :  { %v2226_v0 = vpop.permute.xlu1 %2225 }
 0x7ee   :  { %v2228_v1 = vunpack.i.h.bf16 %v2226_v0  ;;  %v2227_v3 = vunpack.i.l.bf16 %v2226_v0  ;;  %v2221_v54 = vpop.permute.xlu0 %2220 }
 0x7ef   :  { %v2223_v2 = vunpack.i.h.bf16 %v2221_v54  ;;  %v2222_v5 = vunpack.i.l.bf16 %v2221_v54 }
 0x7f0   :  { %v2090_v55 = vpack.c.bf16 %v2228_v1, %v2227_v3 }
 0x7f1   :  { %v2086_v56 = vpack.c.bf16 %v2223_v2, %v2222_v5  ;;  %v2231_v57 = vpop.permute.xlu1 %2230 }
 0x7f2   :  { %v2233_v19 = vunpack.i.h.bf16 %v2231_v57  ;;  %v2232_v58 = vunpack.i.l.bf16 %v2231_v57  ;;  %2091 = vmatprep.subr.bf16.mxu0 %v2090_v55  ;;  %v956_v9 = vpop.permute.xlu0 %955 }
 0x7f3   :  { %2087 = vmatprep.subr.bf16.mxu1 %v2086_v56  ;;  %2093 = vmatpush3.bf16.msra.mxu0 %v2090_v55  ;;  %v977_v12 = vsel %vm141_vm1, %v2493_v16, %v956_v9 }
 0x7f4   :  { %v2293_v59 = vpop.eup %2292  ;;  %v2094_v60 = vpack.c.bf16 %v2233_v19, %v2232_v58  ;;  %2089 = vmatpush3.bf16.msra.mxu1 %v2086_v56 }
 0x7f5   :  { %v2295_v61 = vpop.eup %2294  ;;  %v865_v25 = vmul.f32 %v2293_v59, %v2289_v49  ;;  %v958_v7 = vpop.permute.xlu1 %957  ;;  %2099 = vmatprep.subr.bf16.mxu1 %v2098_v23  ;;  %v2104_v49 = vpack.c.bf16 %v1136_v48, %v1134_v47 }
 0x7f6   :  { %v864_v62 = vmul.f32 %v2295_v61, %v2291_v50  ;;  %2095 = vmatprep.subr.bf16.mxu0 %v2094_v60  ;;  %v964_v10 = vpop.permute.xlu0 %963  ;;  %v978_v17 = vsel %vm141_vm1, %v2491_v15, %v958_v7  ;;  %v2339_v50 = vmov 0.0  }
 0x7f7   :  { %2097 = vmatpush3.bf16.msra.mxu0 %v2094_v60  ;;  %v979_v18 = vsel %vm231_vm3, %v977_v12, %v964_v10 }
 0x7f8   :  { %2003 = vmatprep.mubr.msk.f32.mxu1 %vm231_vm3, %v864_v62 }
 0x7f9   :  { %2004 = vmatmul.mubr.msk.f32.vlgmr.msra.gmra.mrb[16].mxu1 %vm231_vm3, %v865_v25  ;;  %v966_v14 = vpop.permute.xlu1 %965 }
 0x7fa   :  { %v980_v21 = vsel %vm231_vm3, %v978_v17, %v966_v14  ;;  %2101 = vmatpush1.bf16.msra.mxu1 %v2100_v45  ;;  %1226 = vmatprep.mubr.f32.mxu1 %v2339_v50 }
 0x7fb   :  { %2103 = vmatprep.subr.bf16.mxu1 %v2102_v46 }
 0x7fe   :  { %2105 = vmatpush1.bf16.msra.mxu1 %v2104_v49 }
 0x8cc   :  { %v2005_v63 = vpop.f32.mrb[16].mxu1 }
 0x8cd   :  { %973 = vrot.lane.b32.xlu1 %v2005_v63, %s2338_s27  ;;  %v944_v4 = vpop.f32.mrb[17].mxu1 }
 0x8ce   :  { %971 = vrot.lane.b32.xlu0 %v944_v4, %s2338_s27 }
 0x8d2   :  { %1000 = vrot.lane.b32.xlu0 %v2423_v11, %s2334_s23 }
 0x93f   :  { %v974_v13 = vpop.permute.xlu1 %973 }
 0x940   :  { %v972_v20 = vpop.permute.xlu0 %971  ;;  %v983_v24 = vsel %vm981_vm4, %v980_v21, %v974_v13 }
 0x941   :  { %v982_v22 = vsel %vm981_vm4, %v979_v18, %v972_v20 }
 0x942   :  { %2014 = vmatprep.mubr.msk.f32.mxu0 %vm37_vm0, %v982_v22  ;;  %v2606_v22 = vld [vmem:[%s2813_s4 + $0x3] ss:$0 sm:$0xff] }
 0x943   :  { %2015 = vmatmul.mubr.msk.f32.vlgmr.msra.gmra.mrb[2].mxu0 %vm37_vm0, %v983_v24 }
 0x944   :  { %v1001_v11 = vpop.permute.xlu0 %1000 }
 0xa16   :  { %v2016_v26 = vpop.f32.mrb[2].mxu0 }
 0xa17   :  { %v1081_v28 = vadd.f32 %v2016_v26, %v1001_v11  ;;  %v1075_v29 = vpop.f32.mrb[3].mxu0 }
 0xa18   :  { %v1076_v16 = vadd.f32 %v1075_v29, %v1001_v11 }
 0xa19   :  { %v2549_v31 = vadd.f32 %v1081_v28, %v2408_v8 }
 0xa1a   :  { %v2552_v15 = vadd.f32 %v1076_v16, %v2399_v6 }
 0xa1b   :  { %v1089_v32 = vsel %vm37_vm0, %v2549_v31, 0.0  ;;  %v1095_v35 = vmul.f32 %v2549_v31, %v2549_v31 }
 0xa1c   :  { %1090 = vadd.xlane.f32.xlu0 %v1089_v32  ;;  %v1086_v33 = vsel %vm37_vm0, %v2552_v15, 0.0  ;;  %v1094_v34 = vmul.f32 %v2552_v15, %v2552_v15 }
 0xa1d   :  { %1087 = vadd.xlane.f32.xlu1 %v1086_v33  ;;  %v1099_v6 = vsel %vm37_vm0, %v1095_v35, 0.0 }
 0xa1e   :  { %v1096_v8 = vsel %vm37_vm0, %v1094_v34, 0.0 }
 0xa20   :  { %1097 = vadd.xlane.f32.xlu0 %v1096_v8 }
 0xa21   :  { %1100 = vadd.xlane.f32.xlu1 %v1099_v6 }
 0xa32   :  { %2240 = vrot.lane.b32.xlu1 %v2239_v38, %s2325_s15 }
 0xa36   :  { %2235 = vrot.lane.b32.xlu0 %v2234_v41, %s2325_s15  ;;  %1125 = vrot.lane.b32.xlu1 %v1858_v42, %s2324_s0 }
 0xaa9   :  { %v1091_v27 = vpop.xlane.xlu0 %1090 }
 0xaaa   :  { %v1088_v30 = vpop.xlane.xlu1 %1087  ;;  %v1093_v51 = vmul.f32 0.03125, %v1091_v27 }
 0xaab   :  { %v1092_v52 = vmul.f32 0.03125, %v1088_v30 }
 0xaac   :  { %v1105_v54 = vmul.f32 %v1093_v51, %v1093_v51  ;;  %v1109_v9 = vsub.f32 %v2549_v31, %v1093_v51 }
 0xaad   :  { %v1104_v53 = vmul.f32 %v1092_v52, %v1092_v52  ;;  %v1098_v0 = vpop.xlane.xlu0 %1097  ;;  %v1108_v4 = vsub.f32 %v2552_v15, %v1092_v52 }
 0xaae   :  { %v1102_v1 = vmul.f32 0.03125, %v1098_v0  ;;  %v1101_v3 = vpop.xlane.xlu1 %1100  ;;  %v2638_v0 = vld [vmem:[%s2811_s2 + $0x18] sm:$0xff] }
 0xaaf   :  { %v1103_v2 = vmul.f32 0.03125, %v1101_v3 }
 0xab0   :  { %v1106_v5 = vsub.f32 %v1102_v1, %v1104_v53  ;;  %v1401_v1 = vld [vmem:[%s2811_s2 + $0x20] sm:$0xff] }
 0xab1   :  { %v1107_v55 = vsub.f32 %v1103_v2, %v1105_v54  ;;  %v2236_v56 = vpop.permute.xlu0 %2235  ;;  %v2244_v3 = vpack.i.bf16 %v1401_v1, %v2638_v0  ;;  %v2647_v54 = vld [vmem:[%s2811_s2 + $0x68] sm:$0xff]  ;;  %v1405_v2 = vld [vmem:[%s2811_s2 + $0x70] sm:$0xff]  ;;  %v1572_v1 = vld [vmem:[%s2815_s3 + $0xa0] sm:$0xff] }
 0xab2   :  { %v1110_v57 = vadd.f32 1e-05, %v1106_v5  ;;  %v2238_v19 = vunpack.i.h.bf16 %v2236_v56  ;;  %v2237_v58 = vunpack.i.l.bf16 %v2236_v56  ;;  %v2241_v59 = vpop.permute.xlu1 %2240  ;;  %v2254_v5 = vpack.i.bf16 %v1405_v2, %v2647_v54  ;;  %v1407_v56 = vld [vmem:[%s2811_s2 + $0x98] sm:$0xff] }
 0xab3   :  { %v1111_v60 = vadd.f32 1e-05, %v1107_v55  ;;  %v2243_v61 = vunpack.i.h.bf16 %v2241_v59  ;;  %v2242_v62 = vunpack.i.l.bf16 %v2241_v59  ;;  %v2657_v55 = vld [vmem:[%s2811_s2 + $0x90] sm:$0xff] }
 0xab4   :  { %2296 = vrsqrt.f32 %v1110_v57  ;;  %v2106_v25 = vpack.c.bf16 %v2238_v19, %v2237_v58  ;;  %v2665_v57 = vld [vmem:[%s2811_s2 + $0x40] sm:$0xff]  ;;  %v1403_v19 = vld [vmem:[%s2811_s2 + $0x48] sm:$0xff]  ;;  %v2259_v58 = vpack.i.bf16 %v1407_v56, %v2657_v55 }
 0xab5   :  { %2298 = vrsqrt.f32 %v1111_v60  ;;  %v2110_v63 = vpack.c.bf16 %v2243_v61, %v2242_v62  ;;  %v2249_v59 = vpack.i.bf16 %v1403_v19, %v2665_v57  ;;  %v1140_v61 = vlaneseq }
 0xab6   :  { %2107 = vmatprep.subr.bf16.mxu0 %v2106_v25  ;;  %v1126_v13 = vpop.permute.xlu1 %1125 }
 0xab7   :  { %2109 = vmatpush3.bf16.msra.mxu0 %v2106_v25  ;;  %v1141_v25 = vshrl.u32 %v1140_v61, 7 }
 0xab8   :  { %2111 = vmatprep.subr.bf16.mxu0 %v2110_v63 }
 0xabb   :  { %2113 = vmatpush3.bf16.msra.mxu0 %v2110_v63  ;;  %v1142_v63 = vsub.s32 0, %v1141_v25 }
 0xabe   :  { %v2297_v7 = vpop.eup %2296 }
 0xabf   :  { %v2299_v14 = vpop.eup %2298  ;;  %v1114_v10 = vmul.f32 %v2297_v7, %v1108_v4  ;;  %v1138_v7 = vld [vmem:[%s2813_s4 + $0x1] sm:$0x3] }
 0xac0   :  { %v1115_v12 = vmul.f32 %v2299_v14, %v1109_v9  ;;  %v2340_v9 = vmov 0.0|0.0   ;;  %v1552_v14 = vld [vmem:[%s2815_s3] sm:$0xff] }
 0xac1   :  { %v1123_v17 = vmul.f32 %v1858_v42, %v1114_v10  ;;  %2122 = vmatprep.subr.bf16.mxu0 %v2340_v9  ;;  %v1553_v10 = vld [vmem:[%s2815_s3 + $0x8] sm:$0xff] }
 0xac2   :  { %v1124_v18 = vmul.f32 %v1858_v42, %v1115_v12 }
 0xac3   :  { %v1128_v20 = vadd.f32 %v1126_v13, %v1123_v17  ;;  %v1554_v17 = vld [vmem:[%s2815_s3 + $0x10] sm:$0xff] }
 0xac4   :  { %v1129_v21 = vadd.f32 %v1126_v13, %v1124_v18  ;;  %v2123_v13 = vpack.c.bf16 %v1553_v10, %v1552_v14  ;;  %v1555_v18 = vld [vmem:[%s2815_s3 + $0x18] sm:$0xff] }
 0xac5   :  { %1859 = vmatmul.mubr.msk.f32.vlgmr.msra.gmra.mrb[18].mxu1 %vm37_vm0, %v1128_v20  ;;  %2025 = vmatprep.mubr.msk.f32.mxu0 %vm37_vm0, %v1128_v20  ;;  %v1143_v20 = vrot.slane %v1138_v7, %v1142_v63 }
 0xac6   :  { %2026 = vmatmul.mubr.msk.f32.vlgmr.msra.gmra.mrb[4].mxu0 %vm37_vm0, %v1129_v21  ;;  %1232 = vmatprep.mubr.f32.mxu1 %v2339_v50 }
 0xac7   :  { %2124 = vmatpush1.bf16.msra.mxu0 %v2123_v13 }
 0xac8   :  { %2125 = vmatprep.subr.bf16.mxu0 %v2340_v9 }
 0xac9   :  { %1860 = vmatmul.mubr.msk.f32.gmra.mrb[20].mxu1 %vm37_vm0, %v1129_v21  ;;  %v1146_v21 = vsub.s32 1, %v1141_v25 }
 0xaca   :  { %1519 = vmatprep.mubr.f32.mxu1 %v2339_v50 }
 0xb98   :  { %v2608_v24 = vpop.f32.mrb[18].mxu1 }
 0xb99   :  { %v2610_v11 = vpop.f32.mrb[19].mxu1  ;;  %v2027_v26 = vpop.f32.mrb[4].mxu0 }
 0xb9a   :  { %v1338_v28 = vadd.f32 %v2027_v26, %v2606_v22  ;;  %v1332_v29 = vpop.f32.mrb[5].mxu0 }
 0xb9b   :  { %v1333_v16 = vadd.f32 %v2606_v22, %v1332_v29 }
 0xb9c   :  { %v2614_v31 = vpop.f32.mrb[20].mxu1  ;;  %v1367_v15 = vsel %vm1363_vm5, %v1338_v28, -inf  ;;  %v1344_v41 = vsel %vm37_vm0, %v1338_v28, -inf }
 0xb9d   :  { %v2616_v32 = vpop.f32.mrb[21].mxu1  ;;  %1368 = vmax.xlane.f32.xlu1 %v1367_v15  ;;  %v1364_v33 = vsel %vm1363_vm5, %v1333_v16, -inf  ;;  %v1341_v40 = vsel %vm37_vm0, %v1333_v16, -inf  ;;  %v1557_v15 = vld [vmem:[%s2815_s3 + $0x28] sm:$0xff] }
 0xb9e   :  { %1365 = vmax.xlane.f32.xlu0 %v1364_v33  ;;  %v1147_v33 = vrot.slane %v1138_v7, %v1146_v21 }
 0xc2a   :  { %v1369_v34 = vpop.xlane.xlu1 %1368 }
 0xc2b   :  { %v1371_v35 = vsub.f32 %v1338_v28, %v1369_v34  ;;  %v1366_v8 = vpop.xlane.xlu0 %1365 }
 0xc2c   :  { %v1370_v6 = vsub.f32 %v1333_v16, %v1366_v8  ;;  %v1559_v8 = vld [vmem:[%s2815_s3 + $0x38] sm:$0xff] }
 0xc2d   :  { %v1374_v36 = vmul.f32 1.442695, %v1371_v35  ;;  %v1558_v35 = vld [vmem:[%s2815_s3 + $0x30] sm:$0xff] }
 0xc2e   :  { %v1372_v37 = vmul.f32 1.442695, %v1370_v6  ;;  %v2132_v6 = vpack.c.bf16 %v1559_v8, %v1558_v35 }
 0xc2f   :  { %2300 = vpow2.f32 %v1374_v36  ;;  %v1560_v36 = vld [vmem:[%s2815_s3 + $0x40] sm:$0xff] }
 0xc30   :  { %2302 = vpow2.f32 %v1372_v37  ;;  %v1561_v37 = vld [vmem:[%s2815_s3 + $0x48] sm:$0xff] }
 0xc39   :  { %v2618_v38 = vpop.eup %2300 }
 0xc3a   :  { %v2303_v39 = vpop.eup %2302  ;;  %1380 = vrot.lane.b32.xlu1 %v2618_v38, %s2324_s0 }
 0xc3b   :  { %1378 = vrot.lane.b32.xlu0 %v2303_v39, %s2324_s0 }
 0xc5a   :  { %1342 = vmax.xlane.f32.xlu0 %v1341_v40  ;;  %v1563_v40 = vld [vmem:[%s2815_s3 + $0x58] sm:$0xff] }
 0xc5e   :  { %1345 = vmax.xlane.f32.xlu1 %v1344_v41 }
 0xcac   :  { %v1381_v43 = vpop.permute.xlu1 %1380 }
 0xcad   :  { %v1379_v42 = vpop.permute.xlu0 %1378  ;;  %v1387_v44 = vsel %vm37_vm0, %v1381_v43, 0.0 }
 0xcae   :  { %v1384_v23 = vsel %vm37_vm0, %v1379_v42, 0.0  ;;  %v1564_v42 = vld [vmem:[%s2815_s3 + $0x60] sm:$0xff] }
 0xcaf   :  { %1385 = vadd.xlane.f32.xlu0 %v1384_v23  ;;  %v1565_v23 = vld [vmem:[%s2815_s3 + $0x68] sm:$0xff] }
 0xcb0   :  { %v2141_v43 = vpack.c.bf16 %v1565_v23, %v1564_v42 }
 0xcb3   :  { %1388 = vadd.xlane.f32.xlu0 %v1387_v44  ;;  %v1566_v44 = vld [vmem:[%s2815_s3 + $0x70] sm:$0xff] }
 0xce7   :  { %v1343_v45 = vpop.xlane.xlu0 %1342 }
 0xce8   :  { %v1347_v46 = vsub.f32 %v1333_v16, %v1343_v45  ;;  %v1556_v16 = vld [vmem:[%s2815_s3 + $0x20] sm:$0xff]  ;;  %v1567_v45 = vld [vmem:[%s2815_s3 + $0x78] sm:$0xff] }
 0xce9   :  { %v2129_v34 = vpack.c.bf16 %v1557_v15, %v1556_v16 }
 0xcea   :  { %v1349_v47 = vmul.f32 1.442695, %v1347_v46  ;;  %v2144_v46 = vpack.c.bf16 %v1567_v45, %v1566_v44 }
 0xceb   :  { %v1346_v48 = vpop.xlane.xlu1 %1345 }
 0xcec   :  { %2304 = vpow2.f32 %v1349_v47  ;;  %v1348_v49 = vsub.f32 %v1338_v28, %v1346_v48  ;;  %v2126_v28 = vpack.c.bf16 %v1555_v18, %v1554_v17  ;;  %v1568_v47 = vld [vmem:[%s2815_s3 + $0x80] sm:$0xff]  ;;  %v1569_v48 = vld [vmem:[%s2815_s3 + $0x88] sm:$0xff] }
 0xcee   :  { %v1351_v27 = vmul.f32 1.442695, %v1348_v49  ;;  %2127 = vmatpush1.bf16.msra.mxu0 %v2126_v28  ;;  %v2147_v49 = vpack.c.bf16 %v1569_v48, %v1568_v47 }
 0xcef   :  { %2128 = vmatprep.subr.bf16.mxu0 %v2340_v9 }
 0xcf0   :  { %2306 = vpow2.f32 %v1351_v27  ;;  %v1570_v27 = vld [vmem:[%s2815_s3 + $0x90] sm:$0xff] }
 0xcf2   :  { %2130 = vmatpush1.bf16.msra.mxu0 %v2129_v34 }
 0xcf3   :  { %2131 = vmatprep.subr.bf16.mxu0 %v2340_v9 }
 0xcf6   :  { %v2627_v30 = vpop.eup %2304  ;;  %2133 = vmatpush1.bf16.msra.mxu0 %v2132_v6 }
 0xcf7   :  { %v1353_v51 = vsel %vm37_vm0, %v2627_v30, 0.0  ;;  %2134 = vmatprep.subr.bf16.mxu0 %v2340_v9 }
 0xcf8   :  { %1354 = vadd.xlane.f32.xlu1 %v1353_v51  ;;  %v1571_v51 = vld [vmem:[%s2815_s3 + $0x98] sm:$0xff] }
 0xcfa   :  { %v2631_v52 = vpop.eup %2306 }
 0xcfb   :  { %v1356_v53 = vsel %vm37_vm0, %v2631_v52, 0.0 }
 0xcfc   :  { %1357 = vadd.xlane.f32.xlu0 %v1356_v53  ;;  %v2150_v53 = vpack.c.bf16 %v1571_v51, %v1570_v27 }
 0xd09   :  { %2245 = vrot.lane.b32.xlu1 %v2244_v3, %s2328_s17  ;;  %v1573_v3 = vld [vmem:[%s2815_s3 + $0xa8] sm:$0xff] }
 0xd0a   :  { %v2153_v2 = vpack.c.bf16 %v1573_v3, %v1572_v1 }
 0xd0d   :  { %2255 = vrot.lane.b32.xlu1 %v2254_v5, %s2328_s17 }
 0xd11   :  { %2260 = vrot.lane.b32.xlu1 %v2259_v58, %s2328_s17 }
 0xd12   :  { %2250 = vrot.lane.b32.xlu0 %v2249_v59, %s2328_s17 }
 0xd3c   :  { %v1386_v60 = vpop.xlane.xlu0 %1385 }
 0xd3d   :  { %2308 = vrcp.f32 %v1386_v60 }
 0xd40   :  { %v1389_v62 = vpop.xlane.xlu0 %1388 }
 0xd41   :  { %2310 = vrcp.f32 %v1389_v62 }
 0xd47   :  { %v2309_v4 = vpop.eup %2308 }
 0xd48   :  { %v1392_v12 = vmul.f32 %v2309_v4, %v2303_v39  ;;  %v1562_v39 = vld [vmem:[%s2815_s3 + $0x50] sm:$0xff] }
 0xd49   :  { %v2138_v41 = vpack.c.bf16 %v1563_v40, %v1562_v39 }
 0xd4a   :  { %1396 = vrot.lane.b32.xlu0 %v1392_v12, %s2324_s0 }
 0xd4b   :  { %v2311_v26 = vpop.eup %2310 }
 0xd4c   :  { %v1393_v29 = vmul.f32 %v2311_v26, %v2618_v38  ;;  %v2135_v38 = vpack.c.bf16 %v1561_v37, %v1560_v36 }
 0xd4e   :  { %1398 = vrot.lane.b32.xlu1 %v1393_v29, %s2324_s0  ;;  %1148 = vrot.lane.b32.xlu0 %v1143_v20, %s2325_s15 }
 0xd4f   :  { %2136 = vmatpush1.bf16.msra.mxu0 %v2135_v38 }
 0xd50   :  { %2137 = vmatprep.subr.bf16.mxu0 %v2340_v9 }
 0xd52   :  { %1150 = vrot.lane.b32.xlu1 %v1147_v33, %s2325_s15 }
 0xd53   :  { %2139 = vmatpush1.bf16.msra.mxu0 %v2138_v41 }
 0xd54   :  { %2140 = vmatprep.subr.bf16.mxu0 %v2340_v9 }
 0xd57   :  { %2142 = vmatpush1.bf16.msra.mxu0 %v2141_v43 }
 0xd58   :  { %2143 = vmatprep.subr.bf16.mxu0 %v2340_v9 }
 0xd5b   :  { %2145 = vmatpush1.bf16.msra.mxu0 %v2144_v46 }
 0xd5c   :  { %2146 = vmatprep.subr.bf16.mxu0 %v2340_v9 }
 0xd5f   :  { %2148 = vmatpush1.bf16.msra.mxu0 %v2147_v49 }
 0xd60   :  { %2149 = vmatprep.subr.bf16.mxu0 %v2340_v9 }
 0xd63   :  { %2151 = vmatpush1.bf16.msra.mxu0 %v2150_v53 }
 0xd64   :  { %2152 = vmatprep.subr.bf16.mxu0 %v2340_v9 }
 0xd67   :  { %2154 = vmatpush1.bf16.msra.mxu0 %v2153_v2 }
 0xd68   :  { %2155 = vmatprep.subr.bf16.mxu0 %v2340_v9 }
 0xd85   :  { %v1355_v5 = vpop.xlane.xlu1 %1354 }
 0xd86   :  { %2312 = vrcp.f32 %v1355_v5 }
 0xd89   :  { %v2246_v56 = vpop.permute.xlu1 %2245  ;;  %v1358_v19 = vpop.xlane.xlu0 %1357 }
 0xd8a   :  { %v2248_v58 = vunpack.i.h.bf16 %v2246_v56  ;;  %v2247_v59 = vunpack.i.l.bf16 %v2246_v56  ;;  %2314 = vrcp.f32 %v1358_v19 }
 0xd8c   :  { %v1433_v60 = vsel %vm1432_vm6, %v2247_v59, %v2248_v58 }
 0xd8d   :  { %v2256_v62 = vpop.permute.xlu1 %2255  ;;  %v2251_v25 = vpop.permute.xlu0 %2250 }
 0xd8e   :  { %v2258_v63 = vunpack.i.h.bf16 %v2256_v62  ;;  %v2257_v4 = vunpack.i.l.bf16 %v2256_v62  ;;  %v2253_v7 = vunpack.i.h.bf16 %v2251_v25  ;;  %v2252_v14 = vunpack.i.l.bf16 %v2251_v25 }
 0xd90   :  { %v2114_v10 = vpack.c.bf16 %v2253_v7, %v2248_v58  ;;  %v1434_v12 = vsel %vm1432_vm6, %v2252_v14, %v2253_v7  ;;  %v1435_v17 = vsel %vm1432_vm6, %v2257_v4, %v2258_v63  ;;  %v2313_v28 = vpop.eup %2312 }
 0xd91   :  { %v2116_v9 = vpack.c.bf16 %v1434_v12, %v1433_v60  ;;  %v2261_v13 = vpop.permute.xlu1 %2260  ;;  %v1361_v16 = vmul.f32 %v2313_v28, %v2627_v30  ;;  %v1574_v30 = vld [vmem:[%s2815_s3 + $0xb0] sm:$0xff] }
 0xd92   :  { %v2263_v18 = vunpack.i.h.bf16 %v2261_v13  ;;  %v2262_v20 = vunpack.i.l.bf16 %v2261_v13  ;;  %2115 = vmatprep.subr.bf16.mxu1 %v2114_v10 }
 0xd93   :  { %2117 = vmatpush1.bf16.msra.mxu1 %v2116_v9 }
 0xd94   :  { %v1436_v21 = vsel %vm1432_vm6, %v2262_v20, %v2263_v18  ;;  %v2118_v26 = vpack.c.bf16 %v2263_v18, %v2258_v63  ;;  %v2315_v15 = vpop.eup %2314 }
 0xd95   :  { %v2120_v29 = vpack.c.bf16 %v1436_v21, %v1435_v17  ;;  %v1362_v33 = vmul.f32 %v2315_v15, %v2631_v52  ;;  %v1575_v52 = vld [vmem:[%s2815_s3 + $0xb8] sm:$0xff]  ;;  %s2341_s3 = smov 124  }
 0xd96   :  { %2119 = vmatprep.subr.bf16.mxu1 %v2118_v26  ;;  %v2156_v8 = vpack.c.bf16 %v1575_v52, %v1574_v30 }
 0xd97   :  { %2121 = vmatpush1.bf16.msra.mxu1 %v2120_v29 }
 0xd98   :  { %2157 = vmatpush1.bf16.msra.mxu0 %v2156_v8 }
 0xd9a   :  { %1864 = vmatmul.mubr.msk.f32.vlgmr.msra.gmra.mrb[22].mxu1 %vm37_vm0, %v1361_v16 }
 0xd9b   :  { %1525 = vmatprep.mubr.f32.mxu1 %v2339_v50 }
 0xd9e   :  { %1865 = vmatmul.mubr.msk.f32.gmra.mrb[24].mxu1 %vm37_vm0, %v1362_v33 }
 0xd9f   :  { %1531 = vmatprep.mubr.f32.mxu1 %v2339_v50 }
 0xdbc   :  { %v1397_v34 = vpop.permute.xlu0 %1396 }
 0xdbd   :  { %1866 = vmatmul.mubr.msk.f32.gmra.mrb[26].mxu1 %vm37_vm0, %v1397_v34 }
 0xdbe   :  { %1537 = vmatprep.mubr.f32.mxu1 %v2339_v50 }
 0xdc0   :  { %v1399_v35 = vpop.permute.xlu1 %1398  ;;  %v1149_v36 = vpop.permute.xlu0 %1148 }
 0xdc1   :  { %1867 = vmatmul.mubr.msk.f32.gmra.mrb[28].mxu1 %vm37_vm0, %v1399_v35 }
 0xdc4   :  { %v1151_v6 = vpop.permute.xlu1 %1150 }
 0xdc5   :  { %v1153_v37 = vsel %vm1152_vm7, %v1149_v36, %v1151_v6  ;;  %v1231_v38 = vadd.f32 %v2610_v11, %v1151_v6  ;;  %v1237_v41 = vadd.f32 %v2616_v32, %v1151_v6 }
 0xdc6   :  { %v1229_v50 = vadd.f32 %v2608_v24, %v1153_v37  ;;  %v1235_v39 = vadd.f32 %v2614_v31, %v1153_v37  ;;  %v2158_v31 = vpack.c.bf16 %v2665_v57, %v2638_v0  ;;  %v2162_v0 = vpack.c.bf16 %v2657_v55, %v2647_v54 }
 0xdc7   :  { %v1240_v23 = vmax.f32 %v1231_v38, 0.0  ;;  %v1242_v48 = vmax.f32 %v1237_v41, 0.0 }
 0xdc8   :  { %v1239_v40 = vmax.f32 %v1229_v50, 0.0  ;;  %v1241_v46 = vmax.f32 %v1235_v39, 0.0  ;;  %2159 = vmatprep.subr.bf16.mxu1 %v2158_v31 }
 0xdc9   :  { %2161 = vmatpush3.bf16.msra.mxu1 %v2158_v31 }
 0xdca   :  { %2163 = vmatprep.subr.bf16.mxu1 %v2162_v0 }
 0xdcd   :  { %2165 = vmatpush3.bf16.msra.mxu1 %v2162_v0 }
 0xe6d   :  { %v1521_v42 = vpop.f32.mrb[22].mxu1 }
 0xe6e   :  { %v1544_v43 = vmul.f32 %v1521_v42, %v1239_v40  ;;  %v1523_v44 = vpop.f32.mrb[23].mxu1 }
 0xe6f   :  { %v1545_v45 = vmul.f32 %v1523_v44, %v1240_v23  ;;  %1580 = vrot.lane.b32.xlu0 %v1523_v44, %s2325_s15 }
 0xe71   :  { %v1527_v47 = vpop.f32.mrb[24].mxu1  ;;  %1868 = vmatprep.mubr.msk.f32.mxu0 %vm1152_vm7, %v1545_v45 }
 0xe72   :  { %v1546_v24 = vmul.f32 %v1527_v47, %v1241_v46  ;;  %v1529_v49 = vpop.f32.mrb[25].mxu1  ;;  %1669 = vmatmul.mubr.f32.vlgmr.msra.gmra.mrb[6].mxu0 %v1544_v43 }
 0xe73   :  { %v1547_v11 = vmul.f32 %v1529_v49, %v1242_v48  ;;  %1582 = vrot.lane.b32.xlu1 %v1529_v49, %s2325_s15 }
 0xe75   :  { %1869 = vmatprep.mubr.msk.f32.mxu0 %vm1152_vm7, %v1547_v11 }
 0xe76   :  { %1674 = vmatmul.mubr.f32.gmra.mrb[8].mxu0 %v1546_v24 }
 0xe90   :  { %v1533_v32 = vpop.f32.mrb[26].mxu1 }
 0xe91   :  { %v1548_v27 = vmul.f32 %v1533_v32, %v1239_v40  ;;  %v1535_v51 = vpop.f32.mrb[27].mxu1 }
 0xe92   :  { %v1549_v53 = vmul.f32 %v1535_v51, %v1240_v23  ;;  %1584 = vrot.lane.b32.xlu0 %v1535_v51, %s2325_s15 }
 0xe94   :  { %v1539_v1 = vpop.f32.mrb[28].mxu1  ;;  %1870 = vmatprep.mubr.msk.f32.mxu0 %vm1152_vm7, %v1549_v53 }
 0xe95   :  { %v1550_v3 = vmul.f32 %v1539_v1, %v1241_v46  ;;  %v1541_v2 = vpop.f32.mrb[29].mxu1  ;;  %1679 = vmatmul.mubr.f32.gmra.mrb[10].mxu0 %v1548_v27 }
 0xe96   :  { %v1551_v5 = vmul.f32 %v1541_v2, %v1242_v48  ;;  %1586 = vrot.lane.b32.xlu1 %v1541_v2, %s2325_s15 }
 0xe98   :  { %1871 = vmatprep.mubr.msk.f32.mxu0 %vm1152_vm7, %v1551_v5 }
 0xe99   :  { %1684 = vmatmul.mubr.f32.gmra.mrb[12].mxu0 %v1550_v3 }
 0xee1   :  { %v1581_v57 = vpop.permute.xlu0 %1580 }
 0xee5   :  { %v1583_v59 = vpop.permute.xlu1 %1582 }
 0xf04   :  { %v1585_v63 = vpop.permute.xlu0 %1584 }
 0xf08   :  { %v1587_v54 = vpop.permute.xlu1 %1586 }
 0xf45   :  { %v1670_v56 = vpop.f32.mrb[6].mxu0 }
 0xf46   :  { %v1671_v19 = vadd.f32 %v1670_v56, %v1581_v57  ;;  %v1672_v58 = vpop.f32.mrb[7].mxu0 }
 0xf48   :  { %2036 = vmatprep.mubr.msk.f32.mxu1 %vm37_vm0, %v1671_v19 }
 0xf49   :  { %v1675_v60 = vpop.f32.mrb[8].mxu0 }
 0xf4a   :  { %v1676_v62 = vadd.f32 %v1675_v60, %v1583_v59  ;;  %v1677_v25 = vpop.f32.mrb[9].mxu0 }
 0xf4c   :  { %2037 = vmatmul.mubr.msk.f32.vlgmr.msra.gmra.mrb[30].mxu1 %vm37_vm0, %v1676_v62 }
 0xf68   :  { %v1680_v4 = vpop.f32.mrb[10].mxu0 }
 0xf69   :  { %v1681_v7 = vadd.f32 %v1680_v4, %v1585_v63  ;;  %v1682_v14 = vpop.f32.mrb[11].mxu0 }
 0xf6b   :  { %2039 = vmatprep.mubr.msk.f32.mxu1 %vm37_vm0, %v1681_v7 }
 0xf6c   :  { %v1685_v55 = vpop.f32.mrb[12].mxu0 }
 0xf6d   :  { %v1686_v10 = vadd.f32 %v1685_v55, %v1587_v54  ;;  %v1687_v12 = vpop.f32.mrb[13].mxu0 }
 0xf6f   :  { %2040 = vmatmul.mubr.msk.f32.gmra.mrb[32].mxu1 %vm37_vm0, %v1686_v10 }
0x101f   :  { %v2038_v9 = vpop.f32.mrb[30].mxu1 }
0x1020   :  { %v1771_v13 = vpop.f32.mrb[31].mxu1 }
0x1042   :  { %v2041_v17 = vpop.f32.mrb[32].mxu1 }
0x1043   :  { %1794 = vrot.lane.b32.xlu1 %v2041_v17, %s2341_s3  ;;  %v1781_v18 = vpop.f32.mrb[33].mxu1 }
0x1044   :  { %1792 = vrot.lane.b32.xlu0 %v1781_v18, %s2341_s3 }
0x1048   :  { %1800 = vrot.lane.b32.xlu0 %v2606_v22, %s2325_s15  ;;  %v1806_v22 = vand.u32 127, %v1140_v61 }
0x104a   :  { %vm1817_vm8 = vcmp.eq.s32.totalorder %v1806_v22, 3 }
0x10b5   :  { %v1795_v20 = vpop.permute.xlu1 %1794 }
0x10b6   :  { %v1793_v21 = vpop.permute.xlu0 %1792  ;;  %v1799_v26 = vadd.f32 %v2038_v9, %v1795_v20 }
0x10b7   :  { %v1798_v28 = vadd.f32 %v1793_v21, %v1771_v13 }
0x10ba   :  { %v1801_v29 = vpop.permute.xlu0 %1800 }
0x10bb   :  { %v1803_v16 = vadd.f32 %v1801_v29, %v1798_v28  ;;  %v1804_v15 = vadd.f32 %v1801_v29, %v1799_v26 }
0x10bd   :  { %v1807_v33 = vsub.f32 0.0, %v1803_v16  ;;  %v1808_v34 = vsub.f32 0.0, %v1804_v15 }
0x10bf   :  { %v1809_v35 = vmul.f32 1.442695, %v1807_v33  ;;  %v1811_v30 = vmul.f32 1.442695, %v1808_v34 }
0x10c1   :  { %2316 = vpow2.f32 %v1809_v35 }
0x10c2   :  { %2318 = vpow2.f32 %v1811_v30 }
0x10cb   :  { %v2317_v52 = vpop.eup %2316 }
0x10cc   :  { %v2319_v8 = vpop.eup %2318  ;;  %v1813_v6 = vadd.f32 1.0, %v2317_v52 }
0x10cd   :  { %v1814_v36 = vadd.f32 1.0, %v2319_v8 }
0x10ce   :  { %2320 = vrcp.f32 %v1813_v6 }
0x10cf   :  { %2322 = vrcp.f32 %v1814_v36 }
0x10d8   :  { %v2321_v37 = vpop.eup %2320 }
0x10d9   :  { %v2323_v50 = vpop.eup %2322  ;;  %v1818_v38 = vsel %vm1817_vm8, %v2321_v37, %v1803_v16 }
0x10da   :  { %v1819_v39 = vsel %vm1817_vm8, %v2323_v50, %v1804_v15  ;;  %1821 = vst.msk [vmem:[%s2816_s5] sm:$0xff] %vm1820_vm9, %v1818_v38 }
0x10db   :  { %1822 = vst.msk [vmem:[%s2816_s5 + $0x8] sm:$0xff] %vm1820_vm9, %v1819_v39 }

</bundles_post_ra>
